<compile_context>
chip_gen: v7x
topology: tpu7x:2x2x1
jax: 0.10.0
libtpu: 0.0.40
codegen_flags: <defaults>
</compile_context>

<pallas_src>
import jax
import jax.numpy as jnp
from jax.experimental import pallas as pl
from jax.experimental.pallas import tpu as pltpu

# Problem sizes (small, consistent with the module: E % H == 0).
B, L, E, H = 2, 8, 32, 4
A = E // H
LEAKAGE = 0.2
EPS = 1e-5          # PyTorch LayerNorm default

# Graphs per grid block: keep whole graphs together (softmax couples rows of a
# graph); target a few hundred rows per block so large batches split across
# grid steps / TensorCores, tiny batches stay in one step.
GB = max((c for c in range(1, B + 1) if B % c == 0 and c * L <= 256), default=1)

# Packed parameter slab layout (lane width 128, f32).
R_W1 = 0            # rows [0, E):      mlp[0] weight (E, 4E), lanes [0,128)
R_QKAO = E          # rows [E, 2E):     wq||wk lanes [0,64), W_attn [64,96), w_out [96,128)
R_W2P = 2 * E       # rows [2E, 3E):    mlp[2] weight packed 4-across (E, 4E)
R_VROW = 3 * E      # row 3E: bb1 (128); row 3E+1: g0|b0|g1|b1; row 3E+2: bb2
TH_ROWS = 3 * E + 8  # 104 rows -> ~52 KiB, one DMA


def gat_block_kernel(x_ref, adj_ref, pad_ref, th_ref, out_ref):
    f32 = jnp.float32
    x = x_ref[...]        # (GB*L, E)
    adj = adj_ref[...]    # (GB, L, L) float mask, 1.0 where edge exists
    pad = pad_ref[...]    # (GB*L, 1) float mask, 1.0 where padded

    # ---- static slices of the packed parameter slab ----
    w1 = th_ref[R_W1:R_W1 + E, :]                       # (E, 4E)
    wqk = th_ref[R_QKAO:R_QKAO + E, :2 * E]             # (E, 2E)  fused q||k
    wattn = th_ref[R_QKAO:R_QKAO + E, 2 * E:3 * E]      # (E, E)   fused block-diag attn map
    wout = th_ref[R_QKAO:R_QKAO + E, 3 * E:4 * E]       # (E, E)
    w2p = th_ref[R_W2P:R_W2P + E, :]                    # (E, 4E)  w2 packed 4-across
    bb1 = th_ref[R_VROW:R_VROW + 1, :]                  # (1, 4E)
    g0 = th_ref[R_VROW + 1:R_VROW + 2, 0:E]
    b0 = th_ref[R_VROW + 1:R_VROW + 2, E:2 * E]
    g1 = th_ref[R_VROW + 1:R_VROW + 2, 2 * E:3 * E]
    b1 = th_ref[R_VROW + 1:R_VROW + 2, 3 * E:4 * E]
    bb2 = th_ref[R_VROW + 2:R_VROW + 3, 0:E]

    # ---- LayerNorm 0 (over E) ----
    mu = jnp.mean(x, axis=-1, keepdims=True)
    var = jnp.mean((x - mu) ** 2, axis=-1, keepdims=True)
    x0 = (x - mu) * jax.lax.rsqrt(var + EPS) * g0 + b0          # (GB*L, E)

    # ---- GATConv ----
    # Single fused q/k projection; head h owns lanes [h*A, (h+1)*A).
    qk = jnp.dot(x0, wqk, preferred_element_type=f32)           # (GB*L, 2E)
    qB = qk[:, :E].reshape(GB, L, E)
    kB = qk[:, E:2 * E].reshape(GB, L, E)

    # s[b, i, j, :] = leaky_relu(q[b, j, :] + k[b, i, :]) -- lane axis stays E.
    s = qB[:, None, :, :] + kB[:, :, None, :]                   # (GB, L, L, E)
    s = jnp.where(s >= 0, s, LEAKAGE * s)

    # ONE E-wide matmul produces the per-head logits replicated across each
    # head's A lanes; the lane-wise softmax of that IS the head->lane mix.
    logits = jnp.dot(s.reshape(GB * L * L, E), wattn,
                     preferred_element_type=f32).reshape(GB, L, L, E)
    neg = jnp.finfo(f32).min
    logits = jnp.where(adj[:, :, :, None] > 0, logits, neg)     # masked_fill(~adj)

    # Softmax over neighbours j (axis=2). Self-loops guarantee a finite max.
    logits = logits - jnp.max(logits, axis=2, keepdims=True)
    p = jnp.exp(logits)
    p = p / jnp.sum(p, axis=2, keepdims=True)                   # (GB, L, L, E)

    # Aggregate values: already in the "concatenated" (GB, L, E) layout.
    vals = jnp.sum(p * kB[:, None, :, :], axis=2)               # (GB, L, E)

    x1 = jnp.dot(vals.reshape(GB * L, E), wout, preferred_element_type=f32)
    # TODO(synk): dropout is eval-mode identity (no RNG mask applied)
    x2 = x1 + x0

    # ---- LayerNorm 1 ----
    mu2 = jnp.mean(x2, axis=-1, keepdims=True)
    var2 = jnp.mean((x2 - mu2) ** 2, axis=-1, keepdims=True)
    x2n = (x2 - mu2) * jax.lax.rsqrt(var2 + EPS) * g1 + b1

    # ---- MLP ----
    h1 = jnp.maximum(jnp.dot(x2n, w1, preferred_element_type=f32) + bb1, 0.0)
    # mlp[2]: w2 stored four-across -> four K=32 partial matmuls (saves 48 KiB
    # of slab DMA vs. an unpacked (4E, E) block).
    x3 = jnp.dot(h1[:, 0:E], w2p[:, 0:E], preferred_element_type=f32)
    x3 = x3 + jnp.dot(h1[:, E:2 * E], w2p[:, E:2 * E], preferred_element_type=f32)
    x3 = x3 + jnp.dot(h1[:, 2 * E:3 * E], w2p[:, 2 * E:3 * E], preferred_element_type=f32)
    x3 = x3 + jnp.dot(h1[:, 3 * E:4 * E], w2p[:, 3 * E:4 * E], preferred_element_type=f32)
    x3 = x3 + bb2
    x3 = jnp.where(pad > 0, 0.0, x3)                            # masked_fill(padding)
    out_ref[...] = x3 + x2n


def pack_params(params):
    """Host-side, run ONCE: permute QK columns into contiguous per-head q/k
    blocks, fuse the per-head attention weights into one (E, E) matrix, pack
    everything lane-densely into a single (TH_ROWS, 128) slab."""
    (wqk, wattn, wout, g0, b0, g1, b1, w1, bb1, w2, bb2) = [
        jnp.asarray(p, jnp.float32) for p in params]

    heads = jnp.arange(H)
    lanes = jnp.arange(A)
    perm_q = (2 * A * heads[:, None] + lanes[None, :]).reshape(-1)       # (E,)
    perm_k = (2 * A * heads[:, None] + A + lanes[None, :]).reshape(-1)   # (E,)
    wqk64 = jnp.concatenate([wqk[:, perm_q], wqk[:, perm_k]], axis=1)    # (E, 2E)

    # W_attn[e, e'] = wattn[0][e % A] if heads match else 0  (== wblk @ hsel)
    e_idx = jnp.arange(E)
    same_head = (e_idx[:, None] // A) == (e_idx[None, :] // A)
    w_attn_ee = jnp.where(same_head, jnp.tile(wattn[0], H)[:, None], 0.0)

    w2p = jnp.concatenate([w2[i * E:(i + 1) * E, :] for i in range(4)], axis=1)

    th = jnp.zeros((TH_ROWS, 128), jnp.float32)
    th = th.at[R_W1:R_W1 + E, :].set(w1)
    th = th.at[R_QKAO:R_QKAO + E, :2 * E].set(wqk64)
    th = th.at[R_QKAO:R_QKAO + E, 2 * E:3 * E].set(w_attn_ee)
    th = th.at[R_QKAO:R_QKAO + E, 3 * E:4 * E].set(wout)
    th = th.at[R_W2P:R_W2P + E, :].set(w2p)
    th = th.at[R_VROW, :].set(bb1[0])
    th = th.at[R_VROW + 1, 0:E].set(g0[0])
    th = th.at[R_VROW + 1, E:2 * E].set(b0[0])
    th = th.at[R_VROW + 1, 2 * E:3 * E].set(g1[0])
    th = th.at[R_VROW + 1, 3 * E:4 * E].set(b1[0])
    th = th.at[R_VROW + 2, 0:E].set(bb2[0])
    return th


@jax.jit
def gat_block(x, adj_mask, pad_mask, th):
    """x: (B, L, E) f32; adj_mask: (B, L, L) f32; pad_mask: (B, L, 1) f32;
    th: packed (TH_ROWS, 128) parameter slab from pack_params."""
    x_flat = x.reshape(B * L, E)
    pad_flat = pad_mask.reshape(B * L, 1)

    out = pl.pallas_call(
        gat_block_kernel,
        out_shape=jax.ShapeDtypeStruct((B * L, E), jnp.float32),
        grid=(B // GB,),
        in_specs=[
            pl.BlockSpec((GB * L, E), lambda i: (i, 0)),
            pl.BlockSpec((GB, L, L), lambda i: (i, 0, 0)),
            pl.BlockSpec((GB * L, 1), lambda i: (i, 0)),
            pl.BlockSpec((TH_ROWS, 128), lambda i: (0, 0)),
        ],
        out_specs=pl.BlockSpec((GB * L, E), lambda i: (i, 0)),
        compiler_params=pltpu.CompilerParams(
            dimension_semantics=("parallel",)),
    )(x_flat, adj_mask, pad_flat, th)
    return out.reshape(B, L, E)


def reference(x, adj_bool, pad_bool, params):
    """Pure-JAX mirror of the PyTorch forward (reshape/permute path)."""
    wqk, wattn, wout, g0, b0, g1, b1, w1, bb1, w2, bb2 = params

    def ln(t, g, bta):
        mu = t.mean(-1, keepdims=True)
        var = ((t - mu) ** 2).mean(-1, keepdims=True)
        return (t - mu) / jnp.sqrt(var + EPS) * g + bta

    x0 = ln(x, g0[0], b0[0])
    qk = x0 @ wqk                                            # (B, L, 2E)
    qk = qk.reshape(B, L, H, 2 * A).transpose(0, 2, 1, 3)    # (B, H, L, 2A)
    q, k = qk[..., :A], qk[..., A:]
    attn = q[:, :, None, :, :] + k[:, :, :, None, :]         # (B, H, L, L, A)
    attn = jnp.where(attn >= 0, attn, LEAKAGE * attn)
    attn = (attn * wattn[0]).sum(-1)                         # (B, H, L, L)
    attn = jnp.where(adj_bool[:, None], attn, jnp.finfo(jnp.float32).min)
    attn = jax.nn.softmax(attn, axis=-1)
    vals = attn @ k                                          # (B, H, L, A)
    vals = vals.transpose(0, 2, 1, 3).reshape(B, L, E)
    x1 = vals @ wout
    x2 = x1 + x0
    x2n = ln(x2, g1[0], b1[0])
    hdn = jnp.maximum(x2n @ w1 + bb1[0], 0.0)
    x3 = hdn @ w2 + bb2[0]
    x3 = jnp.where(pad_bool, 0.0, x3)
    return x3 + x2n


if __name__ == "__main__":
    key = jax.random.PRNGKey(0)
    keys = jax.random.split(key, 16)

    # Deterministic parameter init (shapes from module __init__); Linear weights
    # stored pre-transposed as (in, out).
    w_qk = jax.random.normal(keys[0], (E, 2 * E), jnp.float32) * 0.1
    w_attn = jax.random.normal(keys[1], (1, A), jnp.float32) * 0.1
    w_out = jax.random.normal(keys[2], (E, E), jnp.float32) * 0.1
    g0 = jnp.ones((1, E), jnp.float32)
    b0 = jnp.zeros((1, E), jnp.float32)
    g1 = jnp.ones((1, E), jnp.float32)
    b1 = jnp.zeros((1, E), jnp.float32)
    w1 = jax.random.normal(keys[3], (E, 4 * E), jnp.float32) * 0.1
    bb1 = jax.random.normal(keys[4], (1, 4 * E), jnp.float32) * 0.1
    w2 = jax.random.normal(keys[5], (4 * E, E), jnp.float32) * 0.1
    bb2 = jax.random.normal(keys[6], (1, E), jnp.float32) * 0.1
    params = (w_qk, w_attn, w_out, g0, b0, g1, b1, w1, bb1, w2, bb2)

    # Inputs
    x = jax.random.normal(keys[7], (B, L, E), jnp.float32)
    adj_bool = jax.random.bernoulli(keys[8], 0.5, (B, L, L))
    adj_bool = adj_bool | jnp.eye(L, dtype=bool)[None]       # keep self-loops
    pad_bool = jnp.zeros((B, L, 1), dtype=bool).at[:, -2:, :].set(True)

    adj_mask = adj_bool.astype(jnp.float32)
    pad_mask = pad_bool.astype(jnp.float32)

    # Parameter repack runs ONCE, outside the per-step jit.
    th = pack_params(params)
    th = jax.block_until_ready(th)

    out = gat_block(x, adj_mask, pad_mask, th)
    out = jax.block_until_ready(out)

    ref = reference(x, adj_bool, pad_bool, params)
    assert out.shape == (B, L, E)
    assert jnp.allclose(out, ref, rtol=1e-4, atol=1e-4), (
        f"max abs diff {jnp.max(jnp.abs(out - ref))}")

    print("KERNEL_OK")
</pallas_src>

<mosaic_0001>
module attributes {stable_mosaic.version = 11 : i64} {
  func.func @gat_block_kernel(%arg0: i32, %arg1: memref<16x32xf32, #tpu.memory_space<vmem>>, %arg2: memref<2x8x8xf32, #tpu.memory_space<vmem>>, %arg3: memref<16x1xf32, #tpu.memory_space<vmem>>, %arg4: memref<104x128xf32, #tpu.memory_space<vmem>>, %arg5: memref<16x32xf32, #tpu.memory_space<vmem>>) attributes {dimension_semantics = [#tpu.dimension_semantics<parallel>], iteration_bounds = array<i64: 1>, scalar_prefetch = 0 : i64, scratch_operands = 0 : i64, tpu.core_type = #tpu.core_type<tc>, window_params = [{transform_indices = @transform_0, window_bounds = array<i64: 16, 32>}, {transform_indices = @transform_1, window_bounds = array<i64: 2, 8, 8>}, {transform_indices = @transform_2, window_bounds = array<i64: 16, 1>}, {pipeline_mode = #tpu.pipeline_mode<synchronous>, transform_indices = @transform_3, window_bounds = array<i64: 104, 128>}, {transform_indices = @transform_4, window_bounds = array<i64: 16, 32>}]} {
    %c0 = arith.constant 0 : index
    %c0_0 = arith.constant 0 : index
    %0 = vector.load %arg1[%c0, %c0_0] : memref<16x32xf32, #tpu.memory_space<vmem>>, vector<16x32xf32>
    %c0_1 = arith.constant 0 : index
    %c0_2 = arith.constant 0 : index
    %c0_3 = arith.constant 0 : index
    %1 = vector.load %arg2[%c0_1, %c0_2, %c0_3] : memref<2x8x8xf32, #tpu.memory_space<vmem>>, vector<2x8x8xf32>
    %c0_4 = arith.constant 0 : index
    %c0_5 = arith.constant 0 : index
    %2 = vector.load %arg3[%c0_4, %c0_5] : memref<16x1xf32, #tpu.memory_space<vmem>>, vector<16x1xf32>
    %c0_6 = arith.constant 0 : index
    %c0_7 = arith.constant 0 : index
    %3 = vector.load %arg4[%c0_6, %c0_7] : memref<104x128xf32, #tpu.memory_space<vmem>>, vector<32x128xf32>
    %c32 = arith.constant 32 : index
    %c0_8 = arith.constant 0 : index
    %4 = vector.load %arg4[%c32, %c0_8] : memref<104x128xf32, #tpu.memory_space<vmem>>, vector<32x64xf32>
    %c32_9 = arith.constant 32 : index
    %c64 = arith.constant 64 : index
    %5 = vector.load %arg4[%c32_9, %c64] : memref<104x128xf32, #tpu.memory_space<vmem>>, vector<32x32xf32>
    %c32_10 = arith.constant 32 : index
    %c96 = arith.constant 96 : index
    %6 = vector.load %arg4[%c32_10, %c96] : memref<104x128xf32, #tpu.memory_space<vmem>>, vector<32x32xf32>
    %c64_11 = arith.constant 64 : index
    %c0_12 = arith.constant 0 : index
    %7 = vector.load %arg4[%c64_11, %c0_12] : memref<104x128xf32, #tpu.memory_space<vmem>>, vector<32x128xf32>
    %c96_13 = arith.constant 96 : index
    %c0_14 = arith.constant 0 : index
    %8 = vector.load %arg4[%c96_13, %c0_14] : memref<104x128xf32, #tpu.memory_space<vmem>>, vector<1x128xf32>
    %c97 = arith.constant 97 : index
    %c0_15 = arith.constant 0 : index
    %9 = vector.load %arg4[%c97, %c0_15] : memref<104x128xf32, #tpu.memory_space<vmem>>, vector<1x32xf32>
    %c97_16 = arith.constant 97 : index
    %c32_17 = arith.constant 32 : index
    %10 = vector.load %arg4[%c97_16, %c32_17] : memref<104x128xf32, #tpu.memory_space<vmem>>, vector<1x32xf32>
    %c97_18 = arith.constant 97 : index
    %c64_19 = arith.constant 64 : index
    %11 = vector.load %arg4[%c97_18, %c64_19] : memref<104x128xf32, #tpu.memory_space<vmem>>, vector<1x32xf32>
    %c97_20 = arith.constant 97 : index
    %c96_21 = arith.constant 96 : index
    %12 = vector.load %arg4[%c97_20, %c96_21] : memref<104x128xf32, #tpu.memory_space<vmem>>, vector<1x32xf32>
    %c98 = arith.constant 98 : index
    %c0_22 = arith.constant 0 : index
    %13 = vector.load %arg4[%c98, %c0_22] : memref<104x128xf32, #tpu.memory_space<vmem>>, vector<1x32xf32>
    %cst = arith.constant dense<0.000000e+00> : vector<16xf32>
    %14 = vector.multi_reduction <add>, %0, %cst [1] : vector<16x32xf32> to vector<16xf32>
    %15 = vector.shape_cast %14 : vector<16xf32> to vector<16x1xf32>
    %cst_23 = arith.constant 3.200000e+01 : f32
    %16 = vector.broadcast %cst_23 : f32 to vector<16x1xf32>
    %17 = arith.divf %15, %16 : vector<16x1xf32>
    %18 = vector.broadcast %17 : vector<16x1xf32> to vector<16x32xf32>
    %19 = arith.subf %0, %18 : vector<16x32xf32>
    %20 = arith.mulf %19, %19 : vector<16x32xf32>
    %cst_24 = arith.constant dense<0.000000e+00> : vector<16xf32>
    %21 = vector.multi_reduction <add>, %20, %cst_24 [1] : vector<16x32xf32> to vector<16xf32>
    %22 = vector.shape_cast %21 : vector<16xf32> to vector<16x1xf32>
    %cst_25 = arith.constant 3.200000e+01 : f32
    %23 = vector.broadcast %cst_25 : f32 to vector<16x1xf32>
    %24 = arith.divf %22, %23 : vector<16x1xf32>
    %25 = vector.broadcast %17 : vector<16x1xf32> to vector<16x32xf32>
    %26 = arith.subf %0, %25 : vector<16x32xf32>
    %cst_26 = arith.constant 9.99999974E-6 : f32
    %27 = vector.broadcast %cst_26 : f32 to vector<16x1xf32>
    %28 = arith.addf %24, %27 : vector<16x1xf32>
    %29 = math.rsqrt %28 : vector<16x1xf32>
    %30 = vector.broadcast %29 : vector<16x1xf32> to vector<16x32xf32>
    %31 = arith.mulf %26, %30 : vector<16x32xf32>
    %32 = vector.broadcast %9 : vector<1x32xf32> to vector<16x32xf32>
    %33 = arith.mulf %31, %32 : vector<16x32xf32>
    %34 = vector.broadcast %10 : vector<1x32xf32> to vector<16x32xf32>
    %35 = arith.addf %33, %34 : vector<16x32xf32>
    %cst_27 = arith.constant dense<0.000000e+00> : vector<16x64xf32>
    %36 = tpu.matmul %35, %4, %cst_27 {dimension_numbers = #tpu.dot_dimension_numbers<[1], [0], [0], [1], [0, 0, 1, 1], [], []>} : vector<16x32xf32>, vector<32x64xf32>, vector<16x64xf32> -> vector<16x64xf32>
    %37 = vector.extract_strided_slice %36 {offsets = [0, 0], sizes = [16, 32], strides = [1, 1]} : vector<16x64xf32> to vector<16x32xf32>
    %38 = vector.shape_cast %37 : vector<16x32xf32> to vector<2x8x32xf32>
    %39 = vector.extract_strided_slice %36 {offsets = [0, 32], sizes = [16, 32], strides = [1, 1]} : vector<16x64xf32> to vector<16x32xf32>
    %40 = vector.shape_cast %39 : vector<16x32xf32> to vector<2x8x32xf32>
    %41 = vector.shape_cast %38 : vector<2x8x32xf32> to vector<2x1x8x32xf32>
    %42 = vector.shape_cast %40 : vector<2x8x32xf32> to vector<2x8x1x32xf32>
    %43 = vector.broadcast %41 : vector<2x1x8x32xf32> to vector<2x8x8x32xf32>
    %44 = vector.broadcast %42 : vector<2x8x1x32xf32> to vector<2x8x8x32xf32>
    %45 = arith.addf %43, %44 : vector<2x8x8x32xf32>
    %cst_28 = arith.constant 0.000000e+00 : f32
    %46 = vector.broadcast %cst_28 : f32 to vector<2x8x8x32xf32>
    %47 = arith.cmpf oge, %45, %46 : vector<2x8x8x32xf32>
    %cst_29 = arith.constant 2.000000e-01 : f32
    %48 = vector.broadcast %cst_29 : f32 to vector<2x8x8x32xf32>
    %49 = arith.mulf %48, %45 : vector<2x8x8x32xf32>
    %50 = arith.select %47, %45, %49 : vector<2x8x8x32xi1>, vector<2x8x8x32xf32>
    %51 = vector.shape_cast %50 : vector<2x8x8x32xf32> to vector<128x32xf32>
    %cst_30 = arith.constant dense<0.000000e+00> : vector<128x32xf32>
    %52 = tpu.matmul %51, %5, %cst_30 {dimension_numbers = #tpu.dot_dimension_numbers<[1], [0], [0], [1], [0, 0, 1, 1], [], []>} : vector<128x32xf32>, vector<32x32xf32>, vector<128x32xf32> -> vector<128x32xf32>
    %53 = vector.shape_cast %52 : vector<128x32xf32> to vector<2x8x8x32xf32>
    %54 = vector.shape_cast %1 : vector<2x8x8xf32> to vector<2x8x8x1xf32>
    %cst_31 = arith.constant 0.000000e+00 : f32
    %55 = vector.broadcast %cst_31 : f32 to vector<2x8x8x1xf32>
    %56 = arith.cmpf ogt, %54, %55 : vector<2x8x8x1xf32>
    %cst_32 = arith.constant -3.40282347E+38 : f32
    %57 = vector.shape_cast %56 : vector<2x8x8x1xi1> to vector<2x8x8x1xi1>
    %58 = vector.broadcast %57 : vector<2x8x8x1xi1> to vector<2x8x8x32xi1>
    %59 = vector.broadcast %cst_32 : f32 to vector<2x8x8x32xf32>
    %60 = arith.select %58, %53, %59 : vector<2x8x8x32xi1>, vector<2x8x8x32xf32>
    %cst_33 = arith.constant dense<0xFF800000> : vector<2x8x32xf32>
    %61 = vector.multi_reduction <maximumf>, %60, %cst_33 [2] : vector<2x8x8x32xf32> to vector<2x8x32xf32>
    %62 = vector.shape_cast %61 : vector<2x8x32xf32> to vector<2x8x1x32xf32>
    %63 = vector.broadcast %62 : vector<2x8x1x32xf32> to vector<2x8x8x32xf32>
    %64 = arith.subf %60, %63 : vector<2x8x8x32xf32>
    %65 = math.exp %64 : vector<2x8x8x32xf32>
    %cst_34 = arith.constant dense<0.000000e+00> : vector<2x8x32xf32>
    %66 = vector.multi_reduction <add>, %65, %cst_34 [2] : vector<2x8x8x32xf32> to vector<2x8x32xf32>
    %67 = vector.shape_cast %66 : vector<2x8x32xf32> to vector<2x8x1x32xf32>
    %68 = vector.broadcast %67 : vector<2x8x1x32xf32> to vector<2x8x8x32xf32>
    %69 = arith.divf %65, %68 : vector<2x8x8x32xf32>
    %70 = vector.shape_cast %40 : vector<2x8x32xf32> to vector<2x1x8x32xf32>
    %71 = vector.broadcast %70 : vector<2x1x8x32xf32> to vector<2x8x8x32xf32>
    %72 = arith.mulf %69, %71 : vector<2x8x8x32xf32>
    %cst_35 = arith.constant dense<0.000000e+00> : vector<2x8x32xf32>
    %73 = vector.multi_reduction <add>, %72, %cst_35 [2] : vector<2x8x8x32xf32> to vector<2x8x32xf32>
    %74 = vector.shape_cast %73 : vector<2x8x32xf32> to vector<16x32xf32>
    %cst_36 = arith.constant dense<0.000000e+00> : vector<16x32xf32>
    %75 = tpu.matmul %74, %6, %cst_36 {dimension_numbers = #tpu.dot_dimension_numbers<[1], [0], [0], [1], [0, 0, 1, 1], [], []>} : vector<16x32xf32>, vector<32x32xf32>, vector<16x32xf32> -> vector<16x32xf32>
    %76 = arith.addf %75, %35 : vector<16x32xf32>
    %cst_37 = arith.constant dense<0.000000e+00> : vector<16xf32>
    %77 = vector.multi_reduction <add>, %76, %cst_37 [1] : vector<16x32xf32> to vector<16xf32>
    %78 = vector.shape_cast %77 : vector<16xf32> to vector<16x1xf32>
    %cst_38 = arith.constant 3.200000e+01 : f32
    %79 = vector.broadcast %cst_38 : f32 to vector<16x1xf32>
    %80 = arith.divf %78, %79 : vector<16x1xf32>
    %81 = vector.broadcast %80 : vector<16x1xf32> to vector<16x32xf32>
    %82 = arith.subf %76, %81 : vector<16x32xf32>
    %83 = arith.mulf %82, %82 : vector<16x32xf32>
    %cst_39 = arith.constant dense<0.000000e+00> : vector<16xf32>
    %84 = vector.multi_reduction <add>, %83, %cst_39 [1] : vector<16x32xf32> to vector<16xf32>
    %85 = vector.shape_cast %84 : vector<16xf32> to vector<16x1xf32>
    %cst_40 = arith.constant 3.200000e+01 : f32
    %86 = vector.broadcast %cst_40 : f32 to vector<16x1xf32>
    %87 = arith.divf %85, %86 : vector<16x1xf32>
    %88 = vector.broadcast %80 : vector<16x1xf32> to vector<16x32xf32>
    %89 = arith.subf %76, %88 : vector<16x32xf32>
    %cst_41 = arith.constant 9.99999974E-6 : f32
    %90 = vector.broadcast %cst_41 : f32 to vector<16x1xf32>
    %91 = arith.addf %87, %90 : vector<16x1xf32>
    %92 = math.rsqrt %91 : vector<16x1xf32>
    %93 = vector.broadcast %92 : vector<16x1xf32> to vector<16x32xf32>
    %94 = arith.mulf %89, %93 : vector<16x32xf32>
    %95 = vector.broadcast %11 : vector<1x32xf32> to vector<16x32xf32>
    %96 = arith.mulf %94, %95 : vector<16x32xf32>
    %97 = vector.broadcast %12 : vector<1x32xf32> to vector<16x32xf32>
    %98 = arith.addf %96, %97 : vector<16x32xf32>
    %cst_42 = arith.constant dense<0.000000e+00> : vector<16x128xf32>
    %99 = tpu.matmul %98, %3, %cst_42 {dimension_numbers = #tpu.dot_dimension_numbers<[1], [0], [0], [1], [0, 0, 1, 1], [], []>} : vector<16x32xf32>, vector<32x128xf32>, vector<16x128xf32> -> vector<16x128xf32>
    %100 = vector.broadcast %8 : vector<1x128xf32> to vector<16x128xf32>
    %101 = arith.addf %99, %100 : vector<16x128xf32>
    %cst_43 = arith.constant 0.000000e+00 : f32
    %102 = vector.broadcast %cst_43 : f32 to vector<16x128xf32>
    %103 = arith.maximumf %101, %102 : vector<16x128xf32>
    %104 = vector.extract_strided_slice %103 {offsets = [0, 0], sizes = [16, 32], strides = [1, 1]} : vector<16x128xf32> to vector<16x32xf32>
    %105 = vector.extract_strided_slice %7 {offsets = [0, 0], sizes = [32, 32], strides = [1, 1]} : vector<32x128xf32> to vector<32x32xf32>
    %cst_44 = arith.constant dense<0.000000e+00> : vector<16x32xf32>
    %106 = tpu.matmul %104, %105, %cst_44 {dimension_numbers = #tpu.dot_dimension_numbers<[1], [0], [0], [1], [0, 0, 1, 1], [], []>} : vector<16x32xf32>, vector<32x32xf32>, vector<16x32xf32> -> vector<16x32xf32>
    %107 = vector.extract_strided_slice %103 {offsets = [0, 32], sizes = [16, 32], strides = [1, 1]} : vector<16x128xf32> to vector<16x32xf32>
    %108 = vector.extract_strided_slice %7 {offsets = [0, 32], sizes = [32, 32], strides = [1, 1]} : vector<32x128xf32> to vector<32x32xf32>
    %cst_45 = arith.constant dense<0.000000e+00> : vector<16x32xf32>
    %109 = tpu.matmul %107, %108, %cst_45 {dimension_numbers = #tpu.dot_dimension_numbers<[1], [0], [0], [1], [0, 0, 1, 1], [], []>} : vector<16x32xf32>, vector<32x32xf32>, vector<16x32xf32> -> vector<16x32xf32>
    %110 = arith.addf %106, %109 : vector<16x32xf32>
    %111 = vector.extract_strided_slice %103 {offsets = [0, 64], sizes = [16, 32], strides = [1, 1]} : vector<16x128xf32> to vector<16x32xf32>
    %112 = vector.extract_strided_slice %7 {offsets = [0, 64], sizes = [32, 32], strides = [1, 1]} : vector<32x128xf32> to vector<32x32xf32>
    %cst_46 = arith.constant dense<0.000000e+00> : vector<16x32xf32>
    %113 = tpu.matmul %111, %112, %cst_46 {dimension_numbers = #tpu.dot_dimension_numbers<[1], [0], [0], [1], [0, 0, 1, 1], [], []>} : vector<16x32xf32>, vector<32x32xf32>, vector<16x32xf32> -> vector<16x32xf32>
    %114 = arith.addf %110, %113 : vector<16x32xf32>
    %115 = vector.extract_strided_slice %103 {offsets = [0, 96], sizes = [16, 32], strides = [1, 1]} : vector<16x128xf32> to vector<16x32xf32>
    %116 = vector.extract_strided_slice %7 {offsets = [0, 96], sizes = [32, 32], strides = [1, 1]} : vector<32x128xf32> to vector<32x32xf32>
    %cst_47 = arith.constant dense<0.000000e+00> : vector<16x32xf32>
    %117 = tpu.matmul %115, %116, %cst_47 {dimension_numbers = #tpu.dot_dimension_numbers<[1], [0], [0], [1], [0, 0, 1, 1], [], []>} : vector<16x32xf32>, vector<32x32xf32>, vector<16x32xf32> -> vector<16x32xf32>
    %118 = arith.addf %114, %117 : vector<16x32xf32>
    %119 = vector.broadcast %13 : vector<1x32xf32> to vector<16x32xf32>
    %120 = arith.addf %118, %119 : vector<16x32xf32>
    %cst_48 = arith.constant 0.000000e+00 : f32
    %121 = vector.broadcast %cst_48 : f32 to vector<16x1xf32>
    %122 = arith.cmpf ogt, %2, %121 : vector<16x1xf32>
    %cst_49 = arith.constant 0.000000e+00 : f32
    %123 = vector.shape_cast %122 : vector<16x1xi1> to vector<16x1xi1>
    %124 = vector.broadcast %123 : vector<16x1xi1> to vector<16x32xi1>
    %125 = vector.broadcast %cst_49 : f32 to vector<16x32xf32>
    %126 = arith.select %124, %125, %120 : vector<16x32xi1>, vector<16x32xf32>
    %127 = arith.addf %126, %98 : vector<16x32xf32>
    %c0_50 = arith.constant 0 : index
    %c0_51 = arith.constant 0 : index
    %128 = vector.load %arg5[%c0_50, %c0_51] : memref<16x32xf32, #tpu.memory_space<vmem>>, vector<16x32xf32>
    tpu.vector_store %arg5[%c0_50, %c0_51], %127 {strides = array<i32>} : memref<16x32xf32, #tpu.memory_space<vmem>>, vector<16x32xf32>,
    return
  }
  func.func @transform_0(%arg0: i32) -> (i32, i32) {
    %c0_i32 = arith.constant 0 : i32
    %c0_i32_0 = arith.constant 0 : i32
    return %arg0, %c0_i32 : i32, i32
  }
  func.func @transform_1(%arg0: i32) -> (i32, i32, i32) {
    %c0_i32 = arith.constant 0 : i32
    %c0_i32_0 = arith.constant 0 : i32
    %c0_i32_1 = arith.constant 0 : i32
    return %arg0, %c0_i32, %c0_i32_0 : i32, i32, i32
  }
  func.func @transform_2(%arg0: i32) -> (i32, i32) {
    %c0_i32 = arith.constant 0 : i32
    %c0_i32_0 = arith.constant 0 : i32
    return %arg0, %c0_i32 : i32, i32
  }
  func.func @transform_3(%arg0: i32) -> (i32, i32) {
    %c0_i32 = arith.constant 0 : i32
    %c0_i32_0 = arith.constant 0 : i32
    %c0_i32_1 = arith.constant 0 : i32
    return %c0_i32, %c0_i32_0 : i32, i32
  }
  func.func @transform_4(%arg0: i32) -> (i32, i32) {
    %c0_i32 = arith.constant 0 : i32
    %c0_i32_0 = arith.constant 0 : i32
    return %arg0, %c0_i32 : i32, i32
  }
}

</mosaic_0001>

<bundles_post_ra>
// kernel: gat_block.1
= control target key start
LH: loop header
LB: loop body
LE: loop exit
PB: predicated region body
PF: predicated region fallthrough
CT: control target
= control target key end

     0   :  { %9 = vsyncpa [#allocation3], 0  ;;  %s2952_s0 = inlined_call_operand.vmem [shape: f32[16,32], index: 0, kind: input, shape index: {}]   ;;  %s2953_s1 = inlined_call_operand.vmem [shape: f32[2,8,8], index: 1, kind: input, shape index: {}]   ;;  %s2954_s2 = inlined_call_operand.vmem [shape: f32[16,1], index: 2, kind: input, shape index: {}]   ;;  %s2955_s3 = inlined_call_operand.hbm [shape: f32[104,128], index: 3, kind: input, shape index: {}]   ;;  %s2956_s4 = inlined_call_operand.hbm [shape: f32[16,32], index: 4, kind: output, shape index: {}]  }
   0x1   :  { %10 = vsyncpa [#allocation4], 0  ;;  %s2395_s15 = smov [#allocation2]   ;;  %s2347_s19 = scalar_lea.hbm %s2955_s3, 1664 }
   0x2   :  { %s22_s16 = sshll.u32 %s2395_s15, 4  ;;  %p2348_p0 = scmp.ne.s32.totalorder %s2955_s3, %s2347_s19  ;;  %s23_s16 = int_to_ptr.vmem [resolvable:$true] %s22_s16 }
   0x3   :  { %p2351_p1 = scmp.lt.u32.totalorder %s2347_s19, %s2955_s3 }
   0x5   :  { %p2353_p2 = pnand %p2351_p1, %p2348_p0 }
   0x7   :  { %2356 = shalt.err (!%p2353_p2)
}
   0x8   :  { %s2357_s24 = scalar_lea.vmem %s23_s16, 1664  ;;  %p2362_p4 = scmp.lt.s32.totalorder %s23_s16, %s23_s16 }
   0x9   :  { %p2358_p3 = scmp.ne.s32.totalorder %s23_s16, %s2357_s24  ;;  %p2363_p5 = scmp.lt.s32.totalorder %s2357_s24, %s2357_s24 }
   0xb   :  { %p2364_p6 = por %p2363_p5, %p2362_p4 }
   0xd   :  { %p2365_p7 = pnand %p2364_p6, %p2358_p3 }
   0xf   :  { %2368 = shalt.err (!%p2365_p7)
}
  0x10   :  { %s2396_s25 = smov 128   ;;  %s2397_s26 = smov 8  }
  0x11   :  { %28 = dma.hbm_to_vmem [thread:$0]  %s2955_s3, 1664, %s23_s16, [#allocation3], %s2396_s25, %s2396_s25, %s2397_s26  }
  0x12   :  { %2391 = dma.done.wait [#allocation3], 1664  }
  0x13   :  { %2392 = vsyncadd [#allocation3], 4294965632  ;;  %vm53_vm0 = vcmask 261120   ;;  %v32_v0 = vld [vmem:[%s2952_s0] sm:$0xff]  ;;  %v33_v1 = vld [vmem:[%s2952_s0 + $0x8] sm:$0xff]  ;;  %s2398_s7 = smov 96   ;;  %v180_v45 = vlaneseq }
  0x14   :  { %v54_v2 = vsel %vm53_vm0, %v32_v0, 0.0  ;;  %v57_v3 = vsel %vm53_vm0, %v33_v1, 0.0  ;;  %v1939_v4 = vld [vmem:[#allocation2 + $0x61] ss:$0 sm:$0xff]  ;;  %v43_v16 = vld [vmem:[#allocation2 + $0x28] sm:$0xff]  ;;  %v44_v18 = vld [vmem:[#allocation2 + $0x30] sm:$0xff] }
  0x15   :  { %55 = vadd.xlane.f32.xlu0 %v54_v2  ;;  %v42_v15 = vld [vmem:[#allocation2 + $0x20] sm:$0xff]  ;;  %v45_v19 = vld [vmem:[#allocation2 + $0x38] sm:$0xff]  ;;  %s2399_s0 = smov 64   ;;  %v2400_v43 = vmov 1966171168   ;;  %v2471_v50 = vshrl.u32 %v180_v45, 7 }
  0x16   :  { %v2143_v17 = vpack.c.bf16 %v43_v16, %v42_v15  ;;  %v2147_v20 = vpack.c.bf16 %v45_v19, %v44_v18  ;;  %v2455_v21 = vpack.i.bf16 %v43_v16, %v42_v15  ;;  %v2467_v37 = vpack.i.bf16 %v45_v19, %v44_v18 }
  0x17   :  { %v178_v44 = vunpack.c.l.s4 %v2400_v43  ;;  %v2480_v55 = vsub.s32 0, %v2471_v50  ;;  %v682_v45 = vsub.s32 3, %v2471_v50 }
  0x18   :  { %2144 = vmatprep.subr.bf16.mxu1 %v2143_v17 }
  0x19   :  { %58 = vadd.xlane.f32.xlu0 %v57_v3  ;;  %2146 = vmatpush3.bf16.msra.mxu1 %v2143_v17  ;;  %v179_v49 = vunpack.c.0.s8 %v178_v44 }
  0x1a   :  { %2148 = vmatprep.subr.bf16.mxu1 %v2147_v20 }
  0x1b   :  { %v182_v51 = vsub.s32 %v179_v49, %v2471_v50 }
  0x1d   :  { %2150 = vmatpush3.bf16.msra.mxu1 %v2147_v20 }
  0x2f   :  { %88 = vrot.lane.b32.xlu0 %v1939_v4, %s2398_s7 }
  0xa2   :  { %v56_v5 = vpop.xlane.xlu0 %55 }
  0xa3   :  { %v61_v6 = vmul.f32 0.03125, %v56_v5 }
  0xa5   :  { %v63_v7 = vsub.f32 %v32_v0, %v61_v6 }
  0xa6   :  { %v59_v8 = vpop.xlane.xlu0 %58 }
  0xa7   :  { %v62_v9 = vmul.f32 0.03125, %v59_v8  ;;  %v65_v10 = vmul.f32 %v63_v7, %v63_v7 }
  0xa9   :  { %v64_v11 = vsub.f32 %v33_v1, %v62_v9  ;;  %v67_v12 = vsel %vm53_vm0, %v65_v10, 0.0 }
  0xaa   :  { %68 = vadd.xlane.f32.xlu1 %v67_v12  ;;  %v89_v30 = vpop.permute.xlu0 %88 }
  0xab   :  { %v66_v13 = vmul.f32 %v64_v11, %v64_v11 }
  0xad   :  { %v70_v14 = vsel %vm53_vm0, %v66_v13, 0.0 }
  0xae   :  { %71 = vadd.xlane.f32.xlu1 %v70_v14 }
  0xbf   :  { %2223 = vrot.lane.b32.xlu1 %v2455_v21, %s2399_s0 }
  0xc3   :  { %2228 = vrot.lane.b32.xlu1 %v2467_v37, %s2399_s0 }
 0x137   :  { %v69_v22 = vpop.xlane.xlu1 %68 }
 0x138   :  { %v73_v23 = vmul.f32 0.03125, %v69_v22 }
 0x13a   :  { %v75_v24 = vadd.f32 1e-05, %v73_v23 }
 0x13b   :  { %v72_v25 = vpop.xlane.xlu1 %71 }
 0x13c   :  { %2274 = vrsqrt.f32 %v75_v24  ;;  %v74_v26 = vmul.f32 0.03125, %v72_v25 }
 0x13e   :  { %v76_v27 = vadd.f32 1e-05, %v74_v26 }
 0x13f   :  { %v2224_v38 = vpop.permute.xlu1 %2223 }
 0x140   :  { %2276 = vrsqrt.f32 %v76_v27  ;;  %v2226_v39 = vunpack.i.h.bf16 %v2224_v38  ;;  %v2225_v40 = vunpack.i.l.bf16 %v2224_v38 }
 0x142   :  { %v2151_v41 = vpack.c.bf16 %v2226_v39, %v2225_v40  ;;  %v675_v40 = vsub.s32 2, %v2471_v50 }
 0x143   :  { %v2229_v42 = vpop.permute.xlu1 %2228 }
 0x144   :  { %2152 = vmatprep.subr.bf16.mxu1 %v2151_v41  ;;  %v2231_v46 = vunpack.i.h.bf16 %v2229_v42  ;;  %v2230_v47 = vunpack.i.l.bf16 %v2229_v42  ;;  %v35_v42 = vld [vmem:[%s2953_s1 + $0x8] sm:$0xff] }
 0x145   :  { %v718_v44 = vrot.slane %v35_v42, %v2480_v55  ;;  %v732_v49 = vrot.slane %v35_v42, %v675_v40 }
 0x146   :  { %v2275_v28 = vpop.eup %2274  ;;  %v2155_v48 = vpack.c.bf16 %v2231_v46, %v2230_v47 }
 0x147   :  { %v79_v29 = vmul.f32 %v2275_v28, %v63_v7 }
 0x149   :  { %v85_v31 = vmul.f32 %v1939_v4, %v79_v29 }
 0x14a   :  { %v2277_v32 = vpop.eup %2276 }
 0x14b   :  { %v80_v33 = vmul.f32 %v2277_v32, %v64_v11  ;;  %v2459_v34 = vadd.f32 %v89_v30, %v85_v31  ;;  %v34_v32 = vld [vmem:[%s2953_s1] sm:$0xff]  ;;  %s2401_s1 = smov 32  }
 0x14c   :  { %v662_v39 = vrot.slane %v34_v32, %v2480_v55  ;;  %v676_v43 = vrot.slane %v34_v32, %v675_v40  ;;  %v683_v47 = vrot.slane %v34_v32, %v682_v45 }
 0x14d   :  { %v86_v35 = vmul.f32 %v1939_v4, %v80_v33  ;;  %2042 = vmatprep.mubr.msk.f32.mxu1 %vm53_vm0, %v2459_v34 }
 0x14f   :  { %v2463_v36 = vadd.f32 %v89_v30, %v86_v35  ;;  %v668_v35 = vsub.s32 1, %v2471_v50 }
 0x151   :  { %2043 = vmatmul.mubr.msk.f32.vlgmr.msra.gmra.mrb[0].mxu1 %vm53_vm0, %v2463_v36  ;;  %v725_v46 = vrot.slane %v35_v42, %v668_v35 }
 0x152   :  { %2154 = vmatpush3.bf16.msra.mxu1 %v2151_v41  ;;  %v669_v41 = vrot.slane %v34_v32, %v668_v35 }
 0x153   :  { %2156 = vmatprep.subr.bf16.mxu1 %v2155_v48 }
 0x156   :  { %2158 = vmatpush3.bf16.msra.mxu1 %v2155_v48  ;;  %v689_v48 = vsub.s32 4, %v2471_v50 }
 0x224   :  { %v2474_v52 = vpop.f32.mrb[0].mxu1 }
 0x225   :  { %v2476_v53 = vpop.f32.mrb[1].mxu1  ;;  %v232_v6 = vrot.slane %v2474_v52, %v182_v51  ;;  %v225_v12 = vcombine.high %v2474_v52, %v2474_v52 }
 0x226   :  { %v183_v54 = vrot.slane %v2476_v53, %v182_v51  ;;  %v176_v56 = vcombine.high %v2476_v53, %v2476_v53 }
 0x227   :  { %v240_v11 = vcombine.high %v232_v6, %v232_v6  ;;  %v248_v14 = vrot.slane %v232_v6, %v182_v51  ;;  %v239_v17 = vrot.slane %v225_v12, %v182_v51 }
 0x228   :  { %v199_v57 = vrot.slane %v183_v54, %v182_v51  ;;  %v191_v58 = vcombine.high %v183_v54, %v183_v54  ;;  %v190_v59 = vrot.slane %v176_v56, %v182_v51  ;;  %v696_v54 = vsub.s32 5, %v2471_v50 }
 0x229   :  { %v262_v16 = vrot.slane %v240_v11, %v182_v51  ;;  %v309_v18 = vrot.slane %v248_v14, %v2480_v55  ;;  %v270_v19 = vcombine.high %v248_v14, %v248_v14  ;;  %v241_v23 = vcombine.high %v239_v17, %v239_v17 }
 0x22a   :  { %v277_v60 = vrot.slane %v199_v57, %v2480_v55  ;;  %v213_v61 = vrot.slane %v191_v58, %v182_v51  ;;  %v221_v62 = vcombine.high %v199_v57, %v199_v57  ;;  %v192_v1 = vcombine.high %v190_v59, %v190_v59 }
 0x22b   :  { %v206_v3 = vrot.slane %v190_v59, %v182_v51  ;;  %v313_v20 = vrot.slane %v262_v16, %v2480_v55  ;;  %v272_v22 = vcombine.high %v262_v16, %v262_v16  ;;  %v317_v24 = vrot.slane %v270_v19, %v2480_v55 }
 0x22c   :  { %338 = vrot.lane.b32.xlu1 %v277_v60, %s2398_s7  ;;  %v281_v63 = vrot.slane %v213_v61, %v2480_v55  ;;  %v223_v0 = vcombine.high %v213_v61, %v213_v61  ;;  %v285_v2 = vrot.slane %v221_v62, %v2480_v55  ;;  %v220_v5 = vrot.slane %v192_v1, %v182_v51 }
 0x22d   :  { %v293_v7 = vrot.slane %v206_v3, %v2480_v55  ;;  %v222_v8 = vcombine.high %v206_v3, %v206_v3  ;;  %v255_v25 = vrot.slane %v239_v17, %v182_v51  ;;  %v321_v26 = vrot.slane %v272_v22, %v2480_v55 }
 0x22e   :  { %340 = vrot.lane.b32.xlu0 %v281_v63, %s2398_s7  ;;  %v289_v4 = vrot.slane %v223_v0, %v2480_v55  ;;  %v297_v9 = vrot.slane %v220_v5, %v2480_v55  ;;  %v224_v10 = vcombine.high %v220_v5, %v220_v5  ;;  %v269_v27 = vrot.slane %v241_v23, %v182_v51 }
 0x22f   :  { %v301_v13 = vrot.slane %v222_v8, %v2480_v55  ;;  %v325_v28 = vrot.slane %v255_v25, %v2480_v55  ;;  %v271_v29 = vcombine.high %v255_v25, %v255_v25  ;;  %v690_v51 = vrot.slane %v34_v32, %v689_v48 }
 0x230   :  { %342 = vrot.lane.b32.xlu1 %v285_v2, %s2398_s7  ;;  %v305_v15 = vrot.slane %v224_v10, %v2480_v55  ;;  %v329_v30 = vrot.slane %v269_v27, %v2480_v55  ;;  %v273_v31 = vcombine.high %v269_v27, %v269_v27  ;;  %v739_v56 = vrot.slane %v35_v42, %v682_v45 }
 0x231   :  { %v333_v33 = vrot.slane %v271_v29, %v2480_v55  ;;  %v697_v57 = vrot.slane %v34_v32, %v696_v54  ;;  %v746_v58 = vrot.slane %v35_v42, %v689_v48  ;;  %v710_v60 = vsub.s32 7, %v2471_v50 }
 0x232   :  { %344 = vrot.lane.b32.xlu0 %v289_v4, %s2398_s7  ;;  %v337_v38 = vrot.slane %v273_v31, %v2480_v55  ;;  %v703_v55 = vsub.s32 6, %v2471_v50  ;;  %v753_v61 = vrot.slane %v35_v42, %v696_v54 }
 0x233   :  { %v711_v62 = vrot.slane %v34_v32, %v710_v60  ;;  %v767_v0 = vrot.slane %v35_v42, %v710_v60 }
 0x234   :  { %346 = vrot.lane.b32.xlu1 %v293_v7, %s2398_s7  ;;  %v704_v59 = vrot.slane %v34_v32, %v703_v55  ;;  %v760_v63 = vrot.slane %v35_v42, %v703_v55 }
 0x236   :  { %348 = vrot.lane.b32.xlu0 %v297_v9, %s2398_s7 }
 0x238   :  { %350 = vrot.lane.b32.xlu1 %v301_v13, %s2398_s7 }
 0x23a   :  { %352 = vrot.lane.b32.xlu0 %v305_v15, %s2398_s7 }
 0x23c   :  { %354 = vrot.lane.b32.xlu1 %v309_v18, %s2398_s7 }
 0x23e   :  { %356 = vrot.lane.b32.xlu0 %v313_v20, %s2398_s7 }
 0x240   :  { %358 = vrot.lane.b32.xlu1 %v317_v24, %s2398_s7 }
 0x242   :  { %360 = vrot.lane.b32.xlu0 %v321_v26, %s2398_s7 }
 0x244   :  { %362 = vrot.lane.b32.xlu1 %v325_v28, %s2398_s7 }
 0x246   :  { %364 = vrot.lane.b32.xlu0 %v329_v30, %s2398_s7 }
 0x248   :  { %366 = vrot.lane.b32.xlu1 %v333_v33, %s2398_s7 }
 0x24a   :  { %368 = vrot.lane.b32.xlu0 %v337_v38, %s2398_s7 }
 0x24c   :  { %664 = vbcast.lane.b32.xlu1 %v662_v39, 256 }
 0x24e   :  { %671 = vbcast.lane.b32.xlu0 %v669_v41, 256 }
 0x250   :  { %678 = vbcast.lane.b32.xlu1 %v676_v43, 256 }
 0x252   :  { %720 = vbcast.lane.b32.xlu0 %v718_v44, 256 }
 0x254   :  { %727 = vbcast.lane.b32.xlu1 %v725_v46, 256 }
 0x256   :  { %685 = vbcast.lane.b32.xlu0 %v683_v47, 256 }
 0x258   :  { %734 = vbcast.lane.b32.xlu1 %v732_v49, 256 }
 0x25a   :  { %692 = vbcast.lane.b32.xlu0 %v690_v51, 256 }
 0x25c   :  { %741 = vbcast.lane.b32.xlu1 %v739_v56, 256 }
 0x25e   :  { %699 = vbcast.lane.b32.xlu0 %v697_v57, 256 }
 0x260   :  { %748 = vbcast.lane.b32.xlu1 %v746_v58, 256 }
 0x262   :  { %706 = vbcast.lane.b32.xlu0 %v704_v59, 256 }
 0x264   :  { %755 = vbcast.lane.b32.xlu1 %v753_v61, 256 }
 0x266   :  { %713 = vbcast.lane.b32.xlu0 %v711_v62, 256 }
 0x268   :  { %762 = vbcast.lane.b32.xlu1 %v760_v63, 256 }
 0x26a   :  { %769 = vbcast.lane.b32.xlu0 %v767_v0, 256 }
 0x26c   :  { %1139 = vrot.lane.b32.xlu1 %v2476_v53, %s2398_s7 }
 0x26e   :  { %1141 = vrot.lane.b32.xlu0 %v2474_v52, %s2398_s7 }
 0x270   :  { %2233 = vrot.lane.b32.xlu1 %v2455_v21, %s2401_s1 }
 0x272   :  { %2238 = vrot.lane.b32.xlu0 %v2467_v37, %s2401_s1 }
 0x29e   :  { %v339_v50 = vpop.permute.xlu1 %338 }
 0x29f   :  { %v386_v1 = vadd.f32 %v339_v50, %v2476_v53 }
 0x2a0   :  { %v341_v2 = vpop.permute.xlu0 %340 }
 0x2a1   :  { %vm402_vm1 = vcmp.ge.f32.partialorder %v386_v1, 0.0  ;;  %v418_v3 = vmul.f32 0.2, %v386_v1  ;;  %v387_v4 = vadd.f32 %v341_v2, %v2476_v53 }
 0x2a2   :  { %v343_v5 = vpop.permute.xlu1 %342 }
 0x2a3   :  { %vm403_vm2 = vcmp.ge.f32.partialorder %v387_v4, 0.0  ;;  %v419_v6 = vmul.f32 0.2, %v387_v4  ;;  %v388_v7 = vadd.f32 %v343_v5, %v2476_v53  ;;  %v434_v8 = vsel %vm402_vm1, %v386_v1, %v418_v3 }
 0x2a4   :  { %2053 = vmatprep.mubr.msk.f32.mxu1 %vm53_vm0, %v434_v8  ;;  %v345_v21 = vpop.permute.xlu0 %344 }
 0x2a5   :  { %v435_v9 = vsel %vm403_vm2, %v387_v4, %v419_v6  ;;  %vm404_vm3 = vcmp.ge.f32.partialorder %v388_v7, 0.0  ;;  %v420_v37 = vmul.f32 0.2, %v388_v7  ;;  %v389_v10 = vadd.f32 %v345_v21, %v2476_v53 }
 0x2a6   :  { %2054 = vmatmul.mubr.msk.f32.vlgmr.msra.gmra.mrb[2].mxu1 %vm53_vm0, %v435_v9  ;;  %v347_v11 = vpop.permute.xlu1 %346 }
 0x2a7   :  { %vm405_vm4 = vcmp.ge.f32.partialorder %v389_v10, 0.0  ;;  %v421_v12 = vmul.f32 0.2, %v389_v10  ;;  %v390_v13 = vadd.f32 %v347_v11, %v2476_v53  ;;  %v436_v14 = vsel %vm404_vm3, %v388_v7, %v420_v37 }
 0x2a8   :  { %2056 = vmatprep.mubr.msk.f32.mxu1 %vm53_vm0, %v436_v14  ;;  %v349_v15 = vpop.permute.xlu0 %348 }
 0x2a9   :  { %vm406_vm5 = vcmp.ge.f32.partialorder %v390_v13, 0.0  ;;  %v422_v16 = vmul.f32 0.2, %v390_v13  ;;  %v391_v17 = vadd.f32 %v349_v15, %v2476_v53  ;;  %v437_v18 = vsel %vm405_vm4, %v389_v10, %v421_v12 }
 0x2aa   :  { %2057 = vmatmul.mubr.msk.f32.gmra.mrb[4].mxu1 %vm53_vm0, %v437_v18  ;;  %v351_v19 = vpop.permute.xlu1 %350 }
 0x2ab   :  { %vm407_vm6 = vcmp.ge.f32.partialorder %v391_v17, 0.0  ;;  %v423_v20 = vmul.f32 0.2, %v391_v17  ;;  %v392_v22 = vadd.f32 %v351_v19, %v2476_v53  ;;  %v438_v23 = vsel %vm406_vm5, %v390_v13, %v422_v16 }
 0x2ac   :  { %2059 = vmatprep.mubr.msk.f32.mxu1 %vm53_vm0, %v438_v23  ;;  %v353_v24 = vpop.permute.xlu0 %352 }
 0x2ad   :  { %vm408_vm7 = vcmp.ge.f32.partialorder %v392_v22, 0.0  ;;  %v424_v25 = vmul.f32 0.2, %v392_v22  ;;  %v393_v26 = vadd.f32 %v353_v24, %v2476_v53  ;;  %v439_v27 = vsel %vm407_vm6, %v391_v17, %v423_v20 }
 0x2ae   :  { %v355_v28 = vpop.permute.xlu1 %354  ;;  %2060 = vmatmul.mubr.msk.f32.gmra.mrb[6].mxu1 %vm53_vm0, %v439_v27 }
 0x2af   :  { %vm409_vm8 = vcmp.ge.f32.partialorder %v393_v26, 0.0  ;;  %v425_v29 = vmul.f32 0.2, %v393_v26  ;;  %v394_v30 = vadd.f32 %v2474_v52, %v355_v28  ;;  %v440_v31 = vsel %vm408_vm7, %v392_v22, %v424_v25 }
 0x2b0   :  { %2062 = vmatprep.mubr.msk.f32.mxu1 %vm53_vm0, %v440_v31  ;;  %v357_v32 = vpop.permute.xlu0 %356 }
 0x2b1   :  { %vm410_vm9 = vcmp.ge.f32.partialorder %v394_v30, 0.0  ;;  %v426_v33 = vmul.f32 0.2, %v394_v30  ;;  %v395_v35 = vadd.f32 %v2474_v52, %v357_v32  ;;  %v441_v38 = vsel %vm409_vm8, %v393_v26, %v425_v29 }
 0x2b2   :  { %v359_v39 = vpop.permute.xlu1 %358  ;;  %2063 = vmatmul.mubr.msk.f32.gmra.mrb[8].mxu1 %vm53_vm0, %v441_v38 }
 0x2b3   :  { %vm411_vm10 = vcmp.ge.f32.partialorder %v395_v35, 0.0  ;;  %v427_v53 = vmul.f32 0.2, %v395_v35  ;;  %v396_v40 = vadd.f32 %v2474_v52, %v359_v39  ;;  %v442_v41 = vsel %vm410_vm9, %v394_v30, %v426_v33 }
 0x2b4   :  { %2065 = vmatprep.mubr.msk.f32.mxu1 %vm53_vm0, %v442_v41  ;;  %v361_v42 = vpop.permute.xlu0 %360 }
 0x2b5   :  { %vm412_vm11 = vcmp.ge.f32.partialorder %v396_v40, 0.0  ;;  %v428_v43 = vmul.f32 0.2, %v396_v40  ;;  %v397_v44 = vadd.f32 %v2474_v52, %v361_v42  ;;  %v443_v45 = vsel %vm411_vm10, %v395_v35, %v427_v53 }
 0x2b6   :  { %v363_v46 = vpop.permute.xlu1 %362  ;;  %2066 = vmatmul.mubr.msk.f32.gmra.mrb[10].mxu1 %vm53_vm0, %v443_v45 }
 0x2b7   :  { %vm413_vm12 = vcmp.ge.f32.partialorder %v397_v44, 0.0  ;;  %v429_v47 = vmul.f32 0.2, %v397_v44  ;;  %v398_v48 = vadd.f32 %v2474_v52, %v363_v46  ;;  %v444_v49 = vsel %vm412_vm11, %v396_v40, %v428_v43 }
 0x2b8   :  { %2068 = vmatprep.mubr.msk.f32.mxu1 %vm53_vm0, %v444_v49  ;;  %v365_v51 = vpop.permute.xlu0 %364 }
 0x2b9   :  { %vm414_vm13 = vcmp.ge.f32.partialorder %v398_v48, 0.0  ;;  %v430_v54 = vmul.f32 0.2, %v398_v48  ;;  %v399_v56 = vadd.f32 %v2474_v52, %v365_v51  ;;  %v445_v57 = vsel %vm413_vm12, %v397_v44, %v429_v47 }
 0x2ba   :  { %v367_v55 = vpop.permute.xlu1 %366  ;;  %2069 = vmatmul.mubr.msk.f32.gmra.mrb[12].mxu1 %vm53_vm0, %v445_v57 }
 0x2bb   :  { %vm415_vm14 = vcmp.ge.f32.partialorder %v399_v56, 0.0  ;;  %v431_v58 = vmul.f32 0.2, %v399_v56  ;;  %v400_v59 = vadd.f32 %v2474_v52, %v367_v55  ;;  %v446_v60 = vsel %vm414_vm13, %v398_v48, %v430_v54 }
 0x2bc   :  { %2071 = vmatprep.mubr.msk.f32.mxu1 %vm53_vm0, %v446_v60  ;;  %v369_v61 = vpop.permute.xlu0 %368 }
 0x2bd   :  { %vm416_vm15 = vcmp.ge.f32.partialorder %v400_v59, 0.0  ;;  %v432_v62 = vmul.f32 0.2, %v400_v59  ;;  %v401_v63 = vadd.f32 %v2474_v52, %v369_v61  ;;  %v447_v0 = vsel %vm415_vm14, %v399_v56, %v431_v58 }
 0x2be   :  { %2072 = vmatmul.mubr.msk.f32.gmra.mrb[14].mxu1 %vm53_vm0, %v447_v0  ;;  %v665_v3 = vpop.permute.xlu1 %664 }
 0x2bf   :  { %vm417_vm1 = vcmp.ge.f32.partialorder %v401_v63, 0.0  ;;  %v433_v50 = vmul.f32 0.2, %v401_v63  ;;  %v448_v1 = vsel %vm416_vm15, %v400_v59, %v432_v62  ;;  %vm771_vm3 = vcmp.gt.f32.partialorder %v665_v3, 0.0 }
 0x2c0   :  { %2074 = vmatprep.mubr.msk.f32.mxu1 %vm53_vm0, %v448_v1  ;;  %v672_v4 = vpop.permute.xlu0 %671 }
 0x2c1   :  { %v449_v2 = vsel %vm417_vm1, %v401_v63, %v433_v50  ;;  %vm772_vm2 = vcmp.gt.f32.partialorder %v672_v4, 0.0 }
 0x2c2   :  { %2075 = vmatmul.mubr.msk.f32.gmra.mrb[16].mxu1 %vm53_vm0, %v449_v2  ;;  %v679_v5 = vpop.permute.xlu1 %678 }
 0x2c3   :  { %vm773_vm5 = vcmp.gt.f32.partialorder %v679_v5, 0.0 }
 0x2c4   :  { %v2574_v6 = vpop.permute.xlu0 %720 }
 0x2c5   :  { %vm779_vm11 = vcmp.gt.f32.partialorder %v2574_v6, 0.0 }
 0x2c6   :  { %v2576_v7 = vpop.permute.xlu1 %727 }
 0x2c7   :  { %vm780_vm9 = vcmp.gt.f32.partialorder %v2576_v7, 0.0 }
 0x2c8   :  { %v686_v8 = vpop.permute.xlu0 %685 }
 0x2c9   :  { %vm774_vm4 = vcmp.gt.f32.partialorder %v686_v8, 0.0 }
 0x2ca   :  { %v2578_v52 = vpop.permute.xlu1 %734 }
 0x2cb   :  { %vm781_vm14 = vcmp.gt.f32.partialorder %v2578_v52, 0.0 }
 0x2cc   :  { %v693_v21 = vpop.permute.xlu0 %692 }
 0x2cd   :  { %vm775_vm7 = vcmp.gt.f32.partialorder %v693_v21, 0.0 }
 0x2ce   :  { %v2580_v9 = vpop.permute.xlu1 %741 }
 0x2cf   :  { %vm782_vm12 = vcmp.gt.f32.partialorder %v2580_v9, 0.0 }
 0x2d0   :  { %v700_v37 = vpop.permute.xlu0 %699 }
 0x2d1   :  { %vm776_vm6 = vcmp.gt.f32.partialorder %v700_v37, 0.0 }
 0x2d2   :  { %v2582_v10 = vpop.permute.xlu1 %748 }
 0x2d3   :  { %vm783_vm15 = vcmp.gt.f32.partialorder %v2582_v10, 0.0 }
 0x2d4   :  { %v2584_v11 = vpop.permute.xlu0 %706 }
 0x2d5   :  { %vm777_vm10 = vcmp.gt.f32.partialorder %v2584_v11, 0.0 }
 0x2d6   :  { %v2586_v12 = vpop.permute.xlu1 %755 }
 0x2d7   :  { %vm784_vm13 = vcmp.gt.f32.partialorder %v2586_v12, 0.0 }
 0x2d8   :  { %v2588_v13 = vpop.permute.xlu0 %713 }
 0x2d9   :  { %vm778_vm8 = vcmp.gt.f32.partialorder %v2588_v13, 0.0 }
 0x2da   :  { %v2590_v14 = vpop.permute.xlu1 %762 }
 0x2dc   :  { %v2592_v15 = vpop.permute.xlu0 %769 }
 0x2dd   :  { %vm786_vm1 = vcmp.gt.f32.partialorder %v2592_v15, 0.0 }
 0x2de   :  { %v2594_v16 = vpop.permute.xlu1 %1139 }
 0x2e0   :  { %v2596_v17 = vpop.permute.xlu0 %1141 }
 0x2e2   :  { %v2234_v18 = vpop.permute.xlu1 %2233 }
 0x2e3   :  { %v2236_v20 = vunpack.i.h.bf16 %v2234_v18  ;;  %v2235_v22 = vunpack.i.l.bf16 %v2234_v18 }
 0x2e4   :  { %v2239_v19 = vpop.permute.xlu0 %2238 }
 0x2e5   :  { %v2241_v23 = vunpack.i.h.bf16 %v2239_v19  ;;  %v2240_v24 = vunpack.i.l.bf16 %v2239_v19  ;;  %v2159_v26 = vpack.c.bf16 %v2236_v20, %v2235_v22 }
 0x2e7   :  { %v2163_v25 = vpack.c.bf16 %v2241_v23, %v2240_v24  ;;  %2160 = vmatprep.subr.bf16.mxu0 %v2159_v26 }
 0x2e8   :  { %2162 = vmatpush3.bf16.msra.mxu0 %v2159_v26 }
 0x2e9   :  { %2164 = vmatprep.subr.bf16.mxu0 %v2163_v25 }
 0x2ec   :  { %2166 = vmatpush3.bf16.msra.mxu0 %v2163_v25 }
 0x379   :  { %v2055_v27 = vpop.f32.mrb[2].mxu1 }
 0x37a   :  { %v2598_v28 = vsel %vm772_vm2, %v2055_v27, -3.4028235e+38  ;;  %v580_v29 = vpop.f32.mrb[3].mxu1  ;;  %vm785_vm2 = vcmp.gt.f32.partialorder %v2590_v14, 0.0 }
 0x37b   :  { %v842_v30 = vsel %vm53_vm0, %v2598_v28, -inf  ;;  %v2602_v31 = vsel %vm771_vm3, %v580_v29, -3.4028235e+38  ;;  %vm1289_vm3 = vcmask 1041409  }
 0x37c   :  { %v843_v32 = vrot.slane %v842_v30, 4  ;;  %v835_v33 = vsel %vm53_vm0, %v2602_v31, -inf }
 0x37d   :  { %v836_v35 = vrot.slane %v835_v33, 4  ;;  %v2058_v38 = vpop.f32.mrb[4].mxu1 }
 0x37e   :  { %v844_v39 = vmax.f32 %v842_v30, %v843_v32  ;;  %v2606_v53 = vsel %vm774_vm4, %v2058_v38, -3.4028235e+38  ;;  %v590_v40 = vpop.f32.mrb[5].mxu1  ;;  %vm1291_vm4 = vcmask 1042434  }
 0x37f   :  { %v837_v41 = vmax.f32 %v835_v33, %v836_v35  ;;  %v856_v42 = vsel %vm53_vm0, %v2606_v53, -inf  ;;  %v2610_v43 = vsel %vm773_vm5, %v590_v40, -3.4028235e+38  ;;  %vm1293_vm5 = vcmask 1043459  }
 0x380   :  { %v845_v44 = vrot.slane %v844_v39, 2  ;;  %v857_v45 = vrot.slane %v856_v42, 4  ;;  %v849_v46 = vsel %vm53_vm0, %v2610_v43, -inf }
 0x381   :  { %v838_v47 = vrot.slane %v837_v41, 2  ;;  %v850_v48 = vrot.slane %v849_v46, 4  ;;  %v2061_v49 = vpop.f32.mrb[6].mxu1 }
 0x382   :  { %v846_v51 = vmax.f32 %v844_v39, %v845_v44  ;;  %v858_v54 = vmax.f32 %v856_v42, %v857_v45  ;;  %v2615_v56 = vsel %vm776_vm6, %v2061_v49, -3.4028235e+38  ;;  %v600_v57 = vpop.f32.mrb[7].mxu1  ;;  %vm1295_vm6 = vcmask 1044484  }
 0x383   :  { %v839_v55 = vmax.f32 %v837_v41, %v838_v47  ;;  %v851_v58 = vmax.f32 %v849_v46, %v850_v48  ;;  %v870_v59 = vsel %vm53_vm0, %v2615_v56, -inf  ;;  %v2619_v60 = vsel %vm775_vm7, %v600_v57, -3.4028235e+38 }
 0x384   :  { %v847_v61 = vrot.slane %v846_v51, 1  ;;  %v859_v62 = vrot.slane %v858_v54, 2  ;;  %v871_v63 = vrot.slane %v870_v59, 4  ;;  %v863_v0 = vsel %vm53_vm0, %v2619_v60, -inf }
 0x385   :  { %v840_v50 = vrot.slane %v839_v55, 1  ;;  %v852_v1 = vrot.slane %v851_v58, 2  ;;  %v864_v2 = vrot.slane %v863_v0, 4  ;;  %v2064_v3 = vpop.f32.mrb[8].mxu1  ;;  %vm1297_vm7 = vcmask 1045509  }
 0x386   :  { %v848_v4 = vmax.f32 %v846_v51, %v847_v61  ;;  %v860_v5 = vmax.f32 %v858_v54, %v859_v62  ;;  %v872_v8 = vmax.f32 %v870_v59, %v871_v63  ;;  %v2627_v21 = vsel %vm778_vm8, %v2064_v3, -3.4028235e+38  ;;  %v610_v37 = vpop.f32.mrb[9].mxu1 }
 0x387   :  { %v841_v18 = vmax.f32 %v839_v55, %v840_v50  ;;  %v853_v19 = vmax.f32 %v851_v58, %v852_v1  ;;  %v865_v20 = vmax.f32 %v863_v0, %v864_v2  ;;  %v884_v22 = vsel %vm53_vm0, %v2627_v21, -inf }
 0x388   :  { %v948_v23 = vsub.f32 %v2598_v28, %v848_v4  ;;  %v861_v24 = vrot.slane %v860_v5, 1  ;;  %v873_v25 = vrot.slane %v872_v8, 2  ;;  %v885_v26 = vrot.slane %v884_v22, 4 }
 0x389   :  { %v947_v27 = vsub.f32 %v2602_v31, %v841_v18  ;;  %v854_v29 = vrot.slane %v853_v19, 1  ;;  %v866_v13 = vrot.slane %v865_v20, 2  ;;  %v2636_v30 = vsel %vm777_vm10, %v610_v37, -3.4028235e+38  ;;  %v2067_v32 = vpop.f32.mrb[10].mxu1 }
 0x38a   :  { %v965_v33 = vmul.f32 1.442695, %v948_v23  ;;  %v862_v35 = vmax.f32 %v860_v5, %v861_v24  ;;  %v874_v38 = vmax.f32 %v872_v8, %v873_v25  ;;  %v886_v39 = vmax.f32 %v884_v22, %v885_v26  ;;  %v620_v40 = vpop.f32.mrb[11].mxu1 }
 0x38b   :  { %v963_v28 = vmul.f32 1.442695, %v947_v27  ;;  %v855_v41 = vmax.f32 %v853_v19, %v854_v29  ;;  %v867_v42 = vmax.f32 %v865_v20, %v866_v13  ;;  %v877_v31 = vsel %vm53_vm0, %v2636_v30, -inf }
 0x38c   :  { %2278 = vpow2.f32 %v965_v33  ;;  %v950_v11 = vsub.f32 %v2606_v53, %v862_v35  ;;  %v875_v44 = vrot.slane %v874_v38, 1  ;;  %v887_v45 = vrot.slane %v886_v39, 2 }
 0x38d   :  { %2280 = vpow2.f32 %v963_v28  ;;  %v949_v46 = vsub.f32 %v2610_v43, %v855_v41  ;;  %v868_v47 = vrot.slane %v867_v42, 1  ;;  %v878_v48 = vrot.slane %v877_v31, 4  ;;  %v2070_v49 = vpop.f32.mrb[12].mxu1 }
 0x38e   :  { %v969_v51 = vmul.f32 1.442695, %v950_v11  ;;  %v876_v54 = vmax.f32 %v874_v38, %v875_v44  ;;  %v888_v57 = vmax.f32 %v886_v39, %v887_v45  ;;  %v2647_v55 = vsel %vm780_vm9, %v2067_v32, -3.4028235e+38  ;;  %v630_v58 = vpop.f32.mrb[13].mxu1 }
 0x38f   :  { %v967_v59 = vmul.f32 1.442695, %v949_v46  ;;  %v869_v53 = vmax.f32 %v867_v42, %v868_v47  ;;  %v879_v61 = vmax.f32 %v877_v31, %v878_v48  ;;  %v898_v62 = vsel %vm53_vm0, %v2647_v55, -inf }
 0x390   :  { %2282 = vpow2.f32 %v969_v51  ;;  %v952_v43 = vsub.f32 %v2615_v56, %v876_v54  ;;  %v889_v63 = vrot.slane %v888_v57, 1  ;;  %v899_v0 = vrot.slane %v898_v62, 4 }
 0x391   :  { %2284 = vpow2.f32 %v967_v59  ;;  %v951_v50 = vsub.f32 %v2619_v60, %v869_v53  ;;  %v880_v1 = vrot.slane %v879_v61, 2  ;;  %v2655_v7 = vsel %vm779_vm11, %v620_v40, -3.4028235e+38  ;;  %v2073_v2 = vpop.f32.mrb[14].mxu1 }
 0x392   :  { %v973_v3 = vmul.f32 1.442695, %v952_v43  ;;  %v890_v4 = vmax.f32 %v888_v57, %v889_v63  ;;  %v900_v5 = vmax.f32 %v898_v62, %v899_v0  ;;  %v891_v8 = vsel %vm53_vm0, %v2655_v7, -inf  ;;  %v2659_v37 = vpop.f32.mrb[15].mxu1 }
 0x393   :  { %v971_v56 = vmul.f32 1.442695, %v951_v50  ;;  %v881_v18 = vmax.f32 %v879_v61, %v880_v1  ;;  %v892_v19 = vrot.slane %v891_v8, 4  ;;  %v2663_v60 = vsel %vm782_vm12, %v2070_v49, -3.4028235e+38 }
 0x394   :  { %2286 = vpow2.f32 %v973_v3  ;;  %v954_v6 = vsub.f32 %v2627_v21, %v890_v4  ;;  %v901_v20 = vrot.slane %v900_v5, 2  ;;  %v912_v22 = vsel %vm53_vm0, %v2663_v60, -inf }
 0x395   :  { %2288 = vpow2.f32 %v971_v56  ;;  %v882_v23 = vrot.slane %v881_v18, 1  ;;  %v893_v24 = vmax.f32 %v891_v8, %v892_v19  ;;  %v913_v25 = vrot.slane %v912_v22, 4  ;;  %v2668_v26 = vpop.f32.mrb[16].mxu1 }
 0x396   :  { %v2670_v27 = vpop.eup %2278  ;;  %v977_v29 = vmul.f32 1.442695, %v954_v6  ;;  %v902_v13 = vmax.f32 %v900_v5, %v901_v20  ;;  %v2674_v9 = vsel %vm781_vm14, %v630_v58, -3.4028235e+38  ;;  %v2678_v21 = vsel %vm784_vm13, %v2073_v2, -3.4028235e+38 }
 0x397   :  { %v2680_v32 = vpop.eup %2280  ;;  %v1002_v33 = vsel %vm53_vm0, %v2670_v27, 0.0  ;;  %v883_v35 = vmax.f32 %v881_v18, %v882_v23  ;;  %v894_v38 = vrot.slane %v893_v24, 2  ;;  %v914_v39 = vmax.f32 %v912_v22, %v913_v25  ;;  %v2684_v40 = vpop.f32.mrb[17].mxu1 }
 0x398   :  { %v1003_v28 = vrot.slane %v1002_v33, 4  ;;  %v995_v52 = vsel %vm53_vm0, %v2680_v32, 0.0  ;;  %2290 = vpow2.f32 %v977_v29  ;;  %v903_v41 = vrot.slane %v902_v13, 1 }
 0x399   :  { %v996_v42 = vrot.slane %v995_v52, 4  ;;  %v953_v12 = vsub.f32 %v2636_v30, %v883_v35  ;;  %v895_v31 = vmax.f32 %v893_v24, %v894_v38  ;;  %v915_v11 = vrot.slane %v914_v39, 2 }
 0x39a   :  { %v2689_v44 = vpop.eup %2282  ;;  %v1004_v45 = vadd.f32 %v1003_v28, %v1002_v33  ;;  %v904_v46 = vmax.f32 %v902_v13, %v903_v41  ;;  %v2693_v47 = vsel %vm53_vm0, %v2674_v9, -inf  ;;  %v2697_v48 = vsel %vm53_vm0, %v2678_v21, -inf }
 0x39b   :  { %v2699_v49 = vpop.eup %2284  ;;  %v997_v51 = vadd.f32 %v996_v42, %v995_v52  ;;  %v1016_v30 = vsel %vm53_vm0, %v2689_v44, 0.0  ;;  %v975_v54 = vmul.f32 1.442695, %v953_v12  ;;  %v896_v57 = vrot.slane %v895_v31, 1 }
 0x39c   :  { %v1005_v58 = vrot.slane %v1004_v45, 2  ;;  %v1017_v59 = vrot.slane %v1016_v30, 4  ;;  %v1009_v53 = vsel %vm53_vm0, %v2699_v49, 0.0  ;;  %v956_v61 = vsub.f32 %v2647_v55, %v904_v46 }
 0x39d   :  { %v998_v62 = vrot.slane %v997_v51, 2  ;;  %v1010_v43 = vrot.slane %v1009_v53, 4  ;;  %2292 = vpow2.f32 %v975_v54  ;;  %v897_v63 = vmax.f32 %v895_v31, %v896_v57 }
 0x39e   :  { %v2706_v0 = vpop.eup %2286  ;;  %v1006_v50 = vadd.f32 %v1005_v58, %v1004_v45  ;;  %v1018_v1 = vadd.f32 %v1017_v59, %v1016_v30  ;;  %v981_v2 = vmul.f32 1.442695, %v956_v61  ;;  %v916_v3 = vmax.f32 %v914_v39, %v915_v11 }
 0x39f   :  { %v2708_v4 = vpop.eup %2288  ;;  %v999_v5 = vadd.f32 %v998_v62, %v997_v51  ;;  %v1011_v8 = vadd.f32 %v1010_v43, %v1009_v53  ;;  %v1030_v56 = vsel %vm53_vm0, %v2706_v0, 0.0  ;;  %v955_v18 = vsub.f32 %v2655_v7, %v897_v63 }
 0x3a0   :  { %v1007_v55 = vrot.slane %v1006_v50, 1  ;;  %v1019_v19 = vrot.slane %v1018_v1, 2  ;;  %v1031_v6 = vrot.slane %v1030_v56, 4  ;;  %v1023_v20 = vsel %vm53_vm0, %v2708_v4, 0.0 }
 0x3a1   :  { %v1000_v22 = vrot.slane %v999_v5, 1  ;;  %v1012_v23 = vrot.slane %v1011_v8, 2  ;;  %v1024_v24 = vrot.slane %v1023_v20, 4  ;;  %2294 = vpow2.f32 %v981_v2 }
 0x3a2   :  { %v2715_v25 = vpop.eup %2290  ;;  %v1008_v29 = vadd.f32 %v1007_v55, %v1006_v50  ;;  %v1020_v13 = vadd.f32 %v1019_v19, %v1018_v1  ;;  %v1032_v33 = vadd.f32 %v1031_v6, %v1030_v56  ;;  %v979_v35 = vmul.f32 1.442695, %v955_v18 }
 0x3a3   :  { %v1001_v38 = vadd.f32 %v1000_v22, %v999_v5  ;;  %v1013_v7 = vadd.f32 %v1012_v23, %v1011_v8  ;;  %v1025_v39 = vadd.f32 %v1024_v24, %v1023_v20  ;;  %v1044_v28 = vsel %vm53_vm0, %v2715_v25, 0.0 }
 0x3a4   :  { %2296 = vrcp.f32 %v1008_v29  ;;  %v1021_v52 = vrot.slane %v1020_v13, 1  ;;  %v1033_v41 = vrot.slane %v1032_v33, 2  ;;  %v1045_v42 = vrot.slane %v1044_v28, 4 }
 0x3a5   :  { %2298 = vrcp.f32 %v1001_v38  ;;  %v1014_v12 = vrot.slane %v1013_v7, 1  ;;  %v1026_v31 = vrot.slane %v1025_v39, 2  ;;  %v917_v11 = vrot.slane %v916_v3, 1 }
 0x3a6   :  { %v1022_v45 = vadd.f32 %v1021_v52, %v1020_v13  ;;  %v1034_v46 = vadd.f32 %v1033_v41, %v1032_v33  ;;  %v1046_v51 = vadd.f32 %v1045_v42, %v1044_v28  ;;  %2300 = vpow2.f32 %v979_v35 }
 0x3a7   :  { %v2720_v30 = vpop.eup %2292  ;;  %v1015_v54 = vadd.f32 %v1014_v12, %v1013_v7  ;;  %v1027_v57 = vadd.f32 %v1026_v31, %v1025_v39  ;;  %v918_v58 = vmax.f32 %v916_v3, %v917_v11  ;;  %v906_v59 = vrot.slane %v2693_v47, 4 }
 0x3a8   :  { %2302 = vrcp.f32 %v1022_v45  ;;  %v1035_v53 = vrot.slane %v1034_v46, 1  ;;  %v1047_v61 = vrot.slane %v1046_v51, 2  ;;  %v1037_v62 = vsel %vm53_vm0, %v2720_v30, 0.0 }
 0x3a9   :  { %2304 = vrcp.f32 %v1015_v54  ;;  %v1028_v43 = vrot.slane %v1027_v57, 1  ;;  %v1038_v63 = vrot.slane %v1037_v62, 4  ;;  %v958_v50 = vsub.f32 %v2663_v60, %v918_v58 }
 0x3aa   :  { %v1036_v1 = vadd.f32 %v1035_v53, %v1034_v46  ;;  %v1048_v2 = vadd.f32 %v1047_v61, %v1046_v51  ;;  %v907_v5 = vmax.f32 %v2693_v47, %v906_v59  ;;  %v927_v8 = vrot.slane %v2697_v48, 4 }
 0x3ab   :  { %v2728_v3 = vpop.eup %2294  ;;  %v1029_v56 = vadd.f32 %v1028_v43, %v1027_v57  ;;  %v1039_v18 = vadd.f32 %v1038_v63, %v1037_v62  ;;  %v985_v55 = vmul.f32 1.442695, %v958_v50  ;;  %v2733_v19 = vsel %vm783_vm15, %v2659_v37, -3.4028235e+38 }
 0x3ac   :  { %2306 = vrcp.f32 %v1036_v1  ;;  %v1049_v6 = vrot.slane %v1048_v2, 1  ;;  %v1058_v60 = vsel %vm53_vm0, %v2728_v3, 0.0  ;;  %v908_v20 = vrot.slane %v907_v5, 2 }
 0x3ad   :  { %2308 = vrcp.f32 %v1029_v56  ;;  %v1040_v47 = vrot.slane %v1039_v18, 2  ;;  %v1059_v22 = vrot.slane %v1058_v60, 4  ;;  %v928_v23 = vmax.f32 %v2697_v48, %v927_v8 }
 0x3ae   :  { %v2297_v24 = vpop.eup %2296  ;;  %v1050_v29 = vadd.f32 %v1049_v6, %v1048_v2  ;;  %2310 = vpow2.f32 %v985_v55  ;;  %v909_v13 = vmax.f32 %v907_v5, %v908_v20  ;;  %v919_v52 = vsel %vm53_vm0, %v2733_v19, -inf }
 0x3af   :  { %v2299_v33 = vpop.eup %2298  ;;  %v1110_v10 = vmul.f32 %v2297_v24, %v2670_v27  ;;  %v1041_v37 = vadd.f32 %v1040_v47, %v1039_v18  ;;  %v1060_v35 = vadd.f32 %v1059_v22, %v1058_v60  ;;  %v929_v38 = vrot.slane %v928_v23, 2 }
 0x3b0   :  { %v2739_v7 = vpop.eup %2300  ;;  %v1108_v39 = vmul.f32 %v2299_v33, %v2680_v32  ;;  %2312 = vrcp.f32 %v1050_v29  ;;  %v910_v28 = vrot.slane %v909_v13, 1  ;;  %vm1299_vm8 = vcmask 1046534  }
 0x3b1   :  { %v1146_v48 = vmul.f32 %v2594_v16, %v1110_v10  ;;  %v1042_v41 = vrot.slane %v1041_v37, 1  ;;  %v1061_v42 = vrot.slane %v1060_v35, 2  ;;  %v1051_v27 = vsel %vm53_vm0, %v2739_v7, 0.0 }
 0x3b2   :  { %v2303_v12 = vpop.eup %2302  ;;  %v1145_v31 = vmul.f32 %v2594_v16, %v1108_v39  ;;  %v1052_v32 = vrot.slane %v1051_v27, 4  ;;  %v911_v11 = vmax.f32 %v909_v13, %v910_v28  ;;  %v930_v45 = vmax.f32 %v928_v23, %v929_v38 }
 0x3b3   :  { %v2305_v46 = vpop.eup %2304  ;;  %v1168_v51 = vsel %vm53_vm0, %v1146_v48, 0.0  ;;  %v1114_v54 = vmul.f32 %v2303_v12, %v2689_v44  ;;  %v1043_v57 = vadd.f32 %v1042_v41, %v1041_v37  ;;  %v1062_v58 = vadd.f32 %v1061_v42, %v1060_v35 }
 0x3b4   :  { %v1169_v59 = vrot.slane %v1168_v51, 4  ;;  %v1161_v53 = vsel %vm53_vm0, %v1145_v31, 0.0  ;;  %v1112_v61 = vmul.f32 %v2305_v46, %v2699_v49  ;;  %v1053_v62 = vadd.f32 %v1052_v32, %v1051_v27 }
 0x3b5   :  { %v1162_v43 = vrot.slane %v1161_v53, 4  ;;  %v1148_v63 = vmul.f32 %v2594_v16, %v1114_v54  ;;  %2314 = vrcp.f32 %v1043_v57  ;;  %v1063_v50 = vrot.slane %v1062_v58, 1 }
 0x3b6   :  { %v2307_v1 = vpop.eup %2306  ;;  %v1170_v2 = vadd.f32 %v1169_v59, %v1168_v51  ;;  %v1147_v5 = vmul.f32 %v2594_v16, %v1112_v61  ;;  %v1054_v8 = vrot.slane %v1053_v62, 2  ;;  %v957_v44 = vsub.f32 %v2674_v9, %v911_v11 }
 0x3b7   :  { %v2309_v56 = vpop.eup %2308  ;;  %v1163_v18 = vadd.f32 %v1162_v43, %v1161_v53  ;;  %v2758_v55 = vsel %vm53_vm0, %v1148_v63, 0.0  ;;  %v1118_v49 = vmul.f32 %v2307_v1, %v2706_v0  ;;  %v1064_v6 = vadd.f32 %v1063_v50, %v1062_v58 }
 0x3b8   :  { %v2761_v60 = vpop.eup %2310  ;;  %v1171_v20 = vrot.slane %v1170_v2, 2  ;;  %v1175_v47 = vsel %vm53_vm0, %v1147_v5, 0.0  ;;  %v1116_v22 = vmul.f32 %v2309_v56, %v2708_v4  ;;  %v920_v23 = vrot.slane %v919_v52, 4 }
 0x3b9   :  { %v1164_v24 = vrot.slane %v1163_v18, 2  ;;  %v1183_v29 = vrot.slane %v2758_v55, 4  ;;  %v1176_v9 = vrot.slane %v1175_v47, 4  ;;  %2316 = vrcp.f32 %v1064_v6 }
 0x3ba   :  { %v2313_v13 = vpop.eup %2312  ;;  %v2767_v33 = vmul.f32 %v2594_v16, %v1118_v49  ;;  %v1055_v10 = vadd.f32 %v1054_v8, %v1053_v62  ;;  %v1072_v0 = vsel %vm53_vm0, %v2761_v60, 0.0  ;;  %v983_v37 = vmul.f32 1.442695, %v957_v44 }
 0x3bb   :  { %v2772_v35 = vmul.f32 %v2594_v16, %v1116_v22  ;;  %v1122_v4 = vmul.f32 %v2313_v13, %v2715_v25  ;;  %v1073_v38 = vrot.slane %v1072_v0, 4  ;;  %v931_v39 = vrot.slane %v930_v45, 1 }
 0x3bc   :  { %v1056_v28 = vrot.slane %v1055_v10, 1  ;;  %2318 = vpow2.f32 %v983_v37  ;;  %v921_v48 = vmax.f32 %v919_v52, %v920_v23  ;;  %v2778_v41 = vsel %vm786_vm1, %v2668_v26, -3.4028235e+38 }
 0x3bd   :  { %v1074_v42 = vadd.f32 %v1073_v38, %v1072_v0  ;;  %v932_v27 = vmax.f32 %v930_v45, %v931_v39  ;;  %v940_v12 = vsel %vm53_vm0, %v2778_v41, -inf  ;;  %v2785_v31 = vsel %vm785_vm2, %v2684_v40, -3.4028235e+38 }
 0x3be   :  { %v1057_v25 = vadd.f32 %v1056_v28, %v1055_v10  ;;  %v922_v32 = vrot.slane %v921_v48, 2  ;;  %v941_v11 = vrot.slane %v940_v12, 4  ;;  %v933_v52 = vsel %vm53_vm0, %v2785_v31, -inf }
 0x3bf   :  { %v2315_v46 = vpop.eup %2314  ;;  %v1177_v15 = vadd.f32 %v1176_v9, %v1175_v47  ;;  %v1075_v26 = vrot.slane %v1074_v42, 2  ;;  %v960_v51 = vsub.f32 %v2678_v21, %v932_v27  ;;  %v934_v45 = vrot.slane %v933_v52, 4 }
 0x3c0   :  { %v1120_v54 = vmul.f32 %v2315_v46, %v2720_v30  ;;  %2320 = vrcp.f32 %v1057_v25  ;;  %v923_v57 = vmax.f32 %v921_v48, %v922_v32  ;;  %v942_v58 = vmax.f32 %v940_v12, %v941_v11 }
 0x3c1   :  { %v1076_v14 = vadd.f32 %v1075_v26, %v1074_v42  ;;  %v989_v40 = vmul.f32 1.442695, %v960_v51  ;;  %v935_v59 = vmax.f32 %v933_v52, %v934_v45  ;;  %v1165_v53 = vadd.f32 %v1164_v24, %v1163_v18 }
 0x3c2   :  { %v924_v61 = vrot.slane %v923_v57, 1  ;;  %v943_v62 = vrot.slane %v942_v58, 2  ;;  %v2792_v43 = vmul.f32 %v2594_v16, %v1122_v4  ;;  %v1172_v63 = vadd.f32 %v1171_v20, %v1170_v2 }
 0x3c3   :  { %v2317_v50 = vpop.eup %2316  ;;  %v1077_v1 = vrot.slane %v1076_v14, 1  ;;  %2322 = vpow2.f32 %v989_v40  ;;  %v936_v21 = vrot.slane %v935_v59, 2  ;;  %v1166_v5 = vrot.slane %v1165_v53, 1 }
 0x3c4   :  { %v1126_v30 = vmul.f32 %v2317_v50, %v2728_v3  ;;  %v925_v8 = vmax.f32 %v923_v57, %v924_v61  ;;  %v944_v44 = vmax.f32 %v942_v58, %v943_v62  ;;  %v1151_v56 = vmul.f32 %v2594_v16, %v1120_v54 }
 0x3c5   :  { %v1078_v49 = vadd.f32 %v1077_v1, %v1076_v14  ;;  %v937_v6 = vmax.f32 %v935_v59, %v936_v21  ;;  %v1173_v18 = vrot.slane %v1172_v63, 1  ;;  %v1178_v47 = vrot.slane %v1177_v15, 2 }
 0x3c6   :  { %v2796_v22 = vpop.eup %2318  ;;  %v1154_v23 = vmul.f32 %v2596_v17, %v1126_v30  ;;  %v959_v2 = vsub.f32 %v2733_v19, %v925_v8  ;;  %v945_v20 = vrot.slane %v944_v44, 1  ;;  %v2800_v24 = vadd.f32 %v1166_v5, %v1165_v53 }
 0x3c7   :  { %2324 = vrcp.f32 %v1078_v49  ;;  %v1065_v3 = vsel %vm53_vm0, %v2796_v22, 0.0  ;;  %v938_v9 = vrot.slane %v937_v6, 1  ;;  %v1179_v13 = vadd.f32 %v1178_v47, %v1177_v15 }
 0x3c8   :  { %v1224_v16 = vsel %vm53_vm0, %v1154_v23, 0.0  ;;  %v1066_v10 = vrot.slane %v1065_v3, 4  ;;  %v987_v0 = vmul.f32 1.442695, %v959_v2  ;;  %v946_v37 = vmax.f32 %v944_v44, %v945_v20 }
 0x3c9   :  { %v1225_v4 = vrot.slane %v1224_v16, 4  ;;  %v939_v38 = vmax.f32 %v937_v6, %v938_v9  ;;  %v2805_v39 = vadd.f32 %v1173_v18, %v1172_v63  ;;  %v1184_v19 = vadd.f32 %v1183_v29, %v2758_v55 }
 0x3ca   :  { %v2321_v28 = vpop.eup %2320  ;;  %v1067_v48 = vadd.f32 %v1066_v10, %v1065_v3  ;;  %2326 = vpow2.f32 %v987_v0  ;;  %v962_v42 = vsub.f32 %v2778_v41, %v946_v37  ;;  %v1189_v27 = vsel %vm53_vm0, %v2772_v35, 0.0 }
 0x3cb   :  { %v1226_v12 = vadd.f32 %v1225_v4, %v1224_v16  ;;  %v1124_v25 = vmul.f32 %v2321_v28, %v2739_v7  ;;  %v961_v32 = vsub.f32 %v2785_v31, %v939_v38  ;;  %v1180_v11 = vrot.slane %v1179_v13, 1 }
 0x3cc   :  { %v1068_v52 = vrot.slane %v1067_v48, 2  ;;  %v993_v46 = vmul.f32 1.442695, %v962_v42  ;;  %v1185_v15 = vrot.slane %v1184_v19, 2  ;;  %v1190_v26 = vrot.slane %v1189_v27, 4 }
 0x3cd   :  { %v2815_v51 = vpop.eup %2322  ;;  %v1227_v55 = vrot.slane %v1226_v12, 2  ;;  %v1153_v29 = vmul.f32 %v2596_v17, %v1124_v25  ;;  %v991_v45 = vmul.f32 1.442695, %v961_v32  ;;  %v1196_v41 = vsel %vm53_vm0, %v2767_v33, 0.0 }
 0x3ce   :  { %v1069_v35 = vadd.f32 %v1068_v52, %v1067_v48  ;;  %v1086_v7 = vsel %vm53_vm0, %v2815_v51, 0.0  ;;  %2328 = vpow2.f32 %v993_v46  ;;  %v1186_v31 = vadd.f32 %v1185_v15, %v1184_v19 }
 0x3cf   :  { %v2822_v54 = vadd.f32 %v1227_v55, %v1226_v12  ;;  %v1217_v57 = vsel %vm53_vm0, %v1153_v29, 0.0  ;;  %v1087_v58 = vrot.slane %v1086_v7, 4  ;;  %2330 = vpow2.f32 %v991_v45 }
 0x3d0   :  { %v1218_v14 = vrot.slane %v1217_v57, 4  ;;  %v1070_v40 = vrot.slane %v1069_v35, 1  ;;  %v2825_v59 = vadd.f32 %v1180_v11, %v1179_v13  ;;  %v1191_v53 = vadd.f32 %v1190_v26, %v1189_v27 }
 0x3d1   :  { %v2325_v61 = vpop.eup %2324  ;;  %v1088_v62 = vadd.f32 %v1087_v58, %v1086_v7  ;;  %v1187_v33 = vrot.slane %v1186_v31, 1  ;;  %v1197_v63 = vrot.slane %v1196_v41, 4  ;;  %v1203_v50 = vsel %vm53_vm0, %v1151_v56, 0.0 }
 0x3d2   :  { %v1229_v1 = vrot.slane %v2822_v54, 1  ;;  %v1219_v21 = vadd.f32 %v1218_v14, %v1217_v57  ;;  %v1130_v5 = vmul.f32 %v2325_v61, %v2761_v60  ;;  %v1071_v30 = vadd.f32 %v1070_v40, %v1069_v35 }
 0x3d3   :  { %v1089_v8 = vrot.slane %v1088_v62, 2  ;;  %v1192_v44 = vrot.slane %v1191_v53, 2  ;;  %v1198_v49 = vadd.f32 %v1197_v63, %v1196_v41  ;;  %v1204_v6 = vrot.slane %v1203_v50, 4 }
 0x3d4   :  { %v2830_v18 = vpop.eup %2326  ;;  %v1220_v47 = vrot.slane %v1219_v21, 2  ;;  %v1156_v23 = vmul.f32 %v2596_v17, %v1130_v5  ;;  %2332 = vrcp.f32 %v1071_v30  ;;  %v1210_v56 = vsel %vm53_vm0, %v2792_v43, 0.0 }
 0x3d5   :  { %v1090_v2 = vadd.f32 %v1089_v8, %v1088_v62  ;;  %v1079_v60 = vsel %vm53_vm0, %v2830_v18, 0.0  ;;  %v1193_v20 = vadd.f32 %v1192_v44, %v1191_v53  ;;  %v1199_v3 = vrot.slane %v1198_v49, 2 }
 0x3d6   :  { %v1221_v9 = vadd.f32 %v1220_v47, %v1219_v21  ;;  %v1238_v13 = vsel %vm53_vm0, %v1156_v23, 0.0  ;;  %v1080_v16 = vrot.slane %v1079_v60, 4  ;;  %v1205_v10 = vadd.f32 %v1204_v6, %v1203_v50 }
 0x3d7   :  { %v1239_v0 = vrot.slane %v1238_v13, 4  ;;  %v1091_v37 = vrot.slane %v1090_v2, 1  ;;  %v1194_v4 = vrot.slane %v1193_v20, 1  ;;  %v1200_v38 = vadd.f32 %v1199_v3, %v1198_v49 }
 0x3d8   :  { %v2838_v43 = vpop.eup %2328  ;;  %v1081_v19 = vadd.f32 %v1080_v16, %v1079_v60  ;;  %v1188_v28 = vadd.f32 %v1187_v33, %v1186_v31  ;;  %v1206_v48 = vrot.slane %v1205_v10, 2  ;;  %v1211_v42 = vrot.slane %v1210_v56, 4 }
 0x3d9   :  { %v2840_v27 = vpop.eup %2330  ;;  %v1222_v12 = vrot.slane %v1221_v9, 1  ;;  %v1240_v25 = vadd.f32 %v1239_v0, %v1238_v13  ;;  %v1092_v32 = vadd.f32 %v1091_v37, %v1090_v2  ;;  %v1100_v11 = vsel %vm53_vm0, %v2838_v43, 0.0 }
 0x3da   :  { %v1082_v52 = vrot.slane %v1081_v19, 2  ;;  %v1101_v46 = vrot.slane %v1100_v11, 4  ;;  %v1093_v15 = vsel %vm53_vm0, %v2840_v27, 0.0  ;;  %v1201_v26 = vrot.slane %v1200_v38, 1 }
 0x3db   :  { %2334 = vrcp.f32 %v1092_v32  ;;  %v1094_v55 = vrot.slane %v1093_v15, 4  ;;  %v1195_v29 = vadd.f32 %v1194_v4, %v1193_v20  ;;  %v1207_v45 = vadd.f32 %v1206_v48, %v1205_v10 }
 0x3dc   :  { %vm1301_vm9 = vcmask 1047559   ;;  %v1083_v41 = vadd.f32 %v1082_v52, %v1081_v19  ;;  %v1102_v35 = vadd.f32 %v1101_v46, %v1100_v11  ;;  %v1202_v7 = vadd.f32 %v1201_v26, %v1200_v38 }
 0x3dd   :  { %v1212_v31 = vadd.f32 %v1211_v42, %v1210_v56  ;;  %v1095_v57 = vadd.f32 %v1094_v55, %v1093_v15  ;;  %v1208_v58 = vrot.slane %v1207_v45, 1  ;;  %v1290_v14 = vsel %vm1289_vm3, %v2805_v39, %v2800_v24 }
 0x3de   :  { %v1223_v40 = vadd.f32 %v1222_v12, %v1221_v9  ;;  %v2333_v53 = vpop.eup %2332  ;;  %v1084_v61 = vrot.slane %v1083_v41, 1  ;;  %v1103_v62 = vrot.slane %v1102_v35, 2  ;;  %v1292_v63 = vsel %vm1291_vm4, %v2825_v59, %v1290_v14 }
 0x3df   :  { %v1213_v33 = vrot.slane %v1212_v31, 2  ;;  %v1128_v50 = vmul.f32 %v2333_v53, %v2796_v22  ;;  %v1096_v21 = vrot.slane %v1095_v57, 2  ;;  %v1209_v5 = vadd.f32 %v1208_v58, %v1207_v45 }
 0x3e0   :  { %v1294_v30 = vsel %vm1293_vm5, %v1188_v28, %v1292_v63  ;;  %v1085_v8 = vadd.f32 %v1084_v61, %v1083_v41  ;;  %v1104_v44 = vadd.f32 %v1103_v62, %v1102_v35  ;;  %v1230_v59 = vadd.f32 %v1229_v1, %v2822_v54 }
 0x3e1   :  { %v1214_v49 = vadd.f32 %v1213_v33, %v1212_v31  ;;  %v1296_v6 = vsel %vm1295_vm6, %v1195_v29, %v1294_v30  ;;  %v1155_v24 = vmul.f32 %v2596_v17, %v1128_v50  ;;  %v1097_v39 = vadd.f32 %v1096_v21, %v1095_v57 }
 0x3e2   :  { %v1298_v47 = vsel %vm1297_vm7, %v1202_v7, %v1296_v6  ;;  %2336 = vrcp.f32 %v1085_v8  ;;  %v1105_v22 = vrot.slane %v1104_v44, 1  ;;  %v1241_v2 = vrot.slane %v1240_v25, 2 }
 0x3e3   :  { %v1215_v23 = vrot.slane %v1214_v49, 1  ;;  %v1300_v56 = vsel %vm1299_vm8, %v1209_v5, %v1298_v47  ;;  %v1231_v60 = vsel %vm53_vm0, %v1155_v24, 0.0  ;;  %v1098_v20 = vrot.slane %v1097_v39, 1 }
 0x3e4   :  { %v1303_v3 = vsel %vm1289_vm3, %v1230_v59, %v1223_v40  ;;  %v1232_v9 = vrot.slane %v1231_v60, 4  ;;  %v1106_v13 = vadd.f32 %v1105_v22, %v1104_v44  ;;  %v1242_v1 = vadd.f32 %v1241_v2, %v1240_v25 }
 0x3e5   :  { %v1216_v16 = vadd.f32 %v1215_v23, %v1214_v49  ;;  %v2335_v10 = vpop.eup %2334  ;;  %v1099_v0 = vadd.f32 %v1098_v20, %v1097_v39 }
 0x3e6   :  { %v1233_v37 = vadd.f32 %v1232_v9, %v1231_v60  ;;  %v1134_v4 = vmul.f32 %v2335_v10, %v2815_v51  ;;  %2338 = vrcp.f32 %v1106_v13  ;;  %v1243_v42 = vrot.slane %v1242_v1, 1  ;;  %v2346_v10 = vld [vmem:[#allocation2 + $0x61] ss:$0 sm:$0xff] }
 0x3e7   :  { %v1302_v54 = vsel %vm1301_vm9, %v1216_v16, %v1300_v56  ;;  %2340 = vrcp.f32 %v1099_v0 }
 0x3e8   :  { %2085 = vmatprep.mubr.msk.f32.mxu0 %vm53_vm0, %v1302_v54  ;;  %v1234_v38 = vrot.slane %v1233_v37, 2  ;;  %v1158_v19 = vmul.f32 %v2596_v17, %v1134_v4  ;;  %v1244_v26 = vadd.f32 %v1243_v42, %v1242_v1  ;;  %v39_v42 = vld [vmem:[#allocation2 + $0x8] sm:$0xff] }
 0x3ea   :  { %v1235_v28 = vadd.f32 %v1234_v38, %v1233_v37  ;;  %v1252_v48 = vsel %vm53_vm0, %v1158_v19, 0.0 }
 0x3eb   :  { %v1253_v12 = vrot.slane %v1252_v48, 4 }
 0x3ec   :  { %v2337_v32 = vpop.eup %2336  ;;  %v1236_v11 = vrot.slane %v1235_v28, 1 }
 0x3ed   :  { %v1132_v52 = vmul.f32 %v2337_v32, %v2830_v18  ;;  %v1254_v51 = vadd.f32 %v1253_v12, %v1252_v48  ;;  %v38_v48 = vld [vmem:[#allocation2] sm:$0xff]  ;;  %v40_v32 = vld [vmem:[#allocation2 + $0x10] sm:$0xff] }
 0x3ee   :  { %v1237_v46 = vadd.f32 %v1236_v11, %v1235_v28  ;;  %v2167_v12 = vpack.c.bf16 %v39_v42, %v38_v48  ;;  %v41_v11 = vld [vmem:[#allocation2 + $0x18] sm:$0xff] }
 0x3ef   :  { %v1157_v15 = vmul.f32 %v2596_v17, %v1132_v52  ;;  %v1255_v35 = vrot.slane %v1254_v51, 2  ;;  %v2171_v52 = vpack.c.bf16 %v41_v11, %v40_v32 }
 0x3f0   :  { %v2339_v55 = vpop.eup %2338  ;;  %v1304_v25 = vsel %vm1291_vm4, %v1237_v46, %v1303_v3  ;;  %2168 = vmatprep.subr.bf16.mxu0 %v2167_v12  ;;  %v47_v46 = vld [vmem:[#allocation2 + $0x48] sm:$0xff] }
 0x3f1   :  { %v2341_v29 = vpop.eup %2340  ;;  %v1245_v45 = vsel %vm53_vm0, %v1157_v15, 0.0  ;;  %v1138_v41 = vmul.f32 %v2339_v55, %v2838_v43  ;;  %v1305_v7 = vsel %vm1293_vm5, %v1244_v26, %v1304_v25  ;;  %v1256_v40 = vadd.f32 %v1255_v35, %v1254_v51  ;;  %v46_v51 = vld [vmem:[#allocation2 + $0x40] sm:$0xff]  ;;  %v2891_v15 = vld [vmem:[#allocation2 + $0x50] sm:$0xff]  ;;  %v2893_v55 = vld [vmem:[#allocation2 + $0x58] sm:$0xff] }
 0x3f2   :  { %v1246_v31 = vrot.slane %v1245_v45, 4  ;;  %v1136_v57 = vmul.f32 %v2341_v29, %v2840_v27  ;;  %v2242_v26 = vpack.i.bf16 %v47_v46, %v46_v51  ;;  %v2247_v25 = vpack.i.bf16 %v2893_v55, %v2891_v15 }
 0x3f3   :  { %v1160_v18 = vmul.f32 %v2596_v17, %v1138_v41  ;;  %v1257_v21 = vrot.slane %v1256_v40, 1 }
 0x3f4   :  { %v1247_v58 = vadd.f32 %v1246_v31, %v1245_v45  ;;  %v1159_v14 = vmul.f32 %v2596_v17, %v1136_v57 }
 0x3f5   :  { %v1266_v53 = vsel %vm53_vm0, %v1160_v18, 0.0  ;;  %v1258_v6 = vadd.f32 %v1257_v21, %v1256_v40 }
 0x3f6   :  { %v1248_v61 = vrot.slane %v1247_v58, 2  ;;  %v1259_v62 = vsel %vm53_vm0, %v1159_v14, 0.0  ;;  %v1267_v33 = vrot.slane %v1266_v53, 4 }
 0x3f7   :  { %v1260_v63 = vrot.slane %v1259_v62, 4 }
 0x3f8   :  { %v1249_v43 = vadd.f32 %v1248_v61, %v1247_v58  ;;  %v1268_v50 = vadd.f32 %v1267_v33, %v1266_v53 }
 0x3f9   :  { %v1261_v5 = vadd.f32 %v1260_v63, %v1259_v62 }
 0x3fa   :  { %v1250_v30 = vrot.slane %v1249_v43, 1  ;;  %v1269_v8 = vrot.slane %v1268_v50, 2 }
 0x3fb   :  { %v1262_v27 = vrot.slane %v1261_v5, 2 }
 0x3fc   :  { %v1251_v44 = vadd.f32 %v1250_v30, %v1249_v43  ;;  %v1270_v49 = vadd.f32 %v1269_v8, %v1268_v50 }
 0x3fd   :  { %v1263_v24 = vadd.f32 %v1262_v27, %v1261_v5 }
 0x3fe   :  { %v1271_v17 = vrot.slane %v1270_v49, 1  ;;  %v1306_v39 = vsel %vm1295_vm6, %v1251_v44, %v1305_v7 }
 0x3ff   :  { %v1264_v47 = vrot.slane %v1263_v24, 1  ;;  %v1307_v59 = vsel %vm1297_vm7, %v1258_v6, %v1306_v39  ;;  %v1960_v6 = vld [vmem:[#allocation2 + $0x60] ss:$0 sm:$0xff] }
 0x400   :  { %v1272_v23 = vadd.f32 %v1271_v17, %v1270_v49  ;;  %v2183_v49 = vpack.c.bf16 %v47_v46, %v46_v51 }
 0x401   :  { %v1265_v22 = vadd.f32 %v1264_v47, %v1263_v24 }
 0x403   :  { %v1308_v56 = vsel %vm1299_vm8, %v1265_v22, %v1307_v59 }
 0x404   :  { %v1309_v2 = vsel %vm1301_vm9, %v1272_v23, %v1308_v56  ;;  %v37_v23 = vld [vmem:[%s2954_s2 + $0x8] sm:$0xff]  ;;  %v36_v56 = vld [vmem:[%s2954_s2] sm:$0xff]  ;;  %s2403_s2 = smov [#allocation5]  }
 0x405   :  { %2086 = vmatmul.mubr.msk.f32.vlgmr.msra.gmra.mrb[0].mxu0 %vm53_vm0, %v1309_v2  ;;  %v2402_v2 = vmov 0   ;;  %vm1905_vm10 = vcmp.gt.f32.partialorder %v37_v23, 0.0  ;;  %vm1904_vm11 = vcmp.gt.f32.partialorder %v36_v56, 0.0  ;;  %s1927_s15 = sshll.u32 %s2403_s2, 4  ;;  %s1928_s15 = int_to_ptr.vmem [resolvable:$true] %s1927_s15 }
 0x406   :  { %2170 = vmatpush3.bf16.msra.mxu0 %v2167_v12  ;;  %2273 = vset.pattern.permute.xlu0 %v2402_v2  ;;  %s2369_s16 = scalar_lea.vmem %s1928_s15, 256  ;;  %p2374_p9 = scmp.lt.s32.totalorder %s1928_s15, %s1928_s15 }
 0x407   :  { %2172 = vmatprep.subr.bf16.mxu0 %v2171_v52  ;;  %2272 = vset.pattern.permute.xlu1 %v2402_v2  ;;  %p2370_p8 = scmp.ne.s32.totalorder %s1928_s15, %s2369_s16  ;;  %p2375_p10 = scmp.lt.s32.totalorder %s2369_s16, %s2369_s16 }
 0x409   :  { %p2376_p11 = por %p2375_p10, %p2374_p9 }
 0x40a   :  { %2174 = vmatpush3.bf16.msra.mxu0 %v2171_v52 }
 0x40b   :  { %p2377_p12 = pnand %p2376_p11, %p2370_p8 }
 0x4d8   :  { %v2087_v60 = vpop.f32.mrb[0].mxu0 }
 0x4d9   :  { %v1398_v20 = vadd.f32 %v2087_v60, %v2463_v36  ;;  %v1392_v3 = vpop.f32.mrb[1].mxu0  ;;  %v1907_v60 = vsel %vm1905_vm10, 1, %v2402_v2 }
 0x4da   :  { %v1393_v9 = vadd.f32 %v1392_v3, %v2459_v34 }
 0x4db   :  { %v1404_v13 = vsel %vm53_vm0, %v1398_v20, 0.0 }
 0x4dc   :  { %1405 = vadd.xlane.f32.xlu0 %v1404_v13  ;;  %v1401_v16 = vsel %vm53_vm0, %v1393_v9, 0.0  ;;  %v2187_v13 = vpack.c.bf16 %v2893_v55, %v2891_v15 }
 0x4dd   :  { %1402 = vadd.xlane.f32.xlu1 %v1401_v16 }
 0x4ee   :  { %1427 = vrot.lane.b32.xlu1 %v2346_v10, %s2399_s0 }
 0x4f2   :  { %2243 = vrot.lane.b32.xlu1 %v2242_v26, %s2398_s7 }
 0x4f6   :  { %2248 = vrot.lane.b32.xlu1 %v2247_v25, %s2398_s7 }
 0x569   :  { %v1406_v0 = vpop.xlane.xlu0 %1405 }
 0x56a   :  { %v1408_v37 = vmul.f32 0.03125, %v1406_v0  ;;  %v1403_v4 = vpop.xlane.xlu1 %1402 }
 0x56b   :  { %v1407_v54 = vmul.f32 0.03125, %v1403_v4 }
 0x56c   :  { %v1410_v1 = vsub.f32 %v1398_v20, %v1408_v37  ;;  %v1906_v20 = vsel %vm1904_vm11, 1, %v2402_v2 }
 0x56d   :  { %v1409_v38 = vsub.f32 %v1393_v9, %v1407_v54 }
 0x56e   :  { %v1412_v28 = vmul.f32 %v1410_v1, %v1410_v1  ;;  %v1428_v18 = vpop.permute.xlu1 %1427 }
 0x56f   :  { %v1411_v19 = vmul.f32 %v1409_v38, %v1409_v38 }
 0x570   :  { %v1416_v34 = vsel %vm53_vm0, %v1412_v28, 0.0 }
 0x571   :  { %v1413_v36 = vsel %vm53_vm0, %v1411_v19, 0.0 }
 0x572   :  { %1414 = vadd.xlane.f32.xlu0 %v1413_v36  ;;  %v2244_v43 = vpop.permute.xlu1 %2243 }
 0x573   :  { %v2246_v50 = vunpack.i.h.bf16 %v2244_v43  ;;  %v2245_v21 = vunpack.i.l.bf16 %v2244_v43 }
 0x575   :  { %v2175_v5 = vpack.c.bf16 %v2246_v50, %v2245_v21 }
 0x576   :  { %1417 = vadd.xlane.f32.xlu0 %v1416_v34  ;;  %v2249_v30 = vpop.permute.xlu1 %2248 }
 0x577   :  { %v2251_v8 = vunpack.i.h.bf16 %v2249_v30  ;;  %v2250_v27 = vunpack.i.l.bf16 %v2249_v30  ;;  %2176 = vmatprep.subr.bf16.mxu0 %v2175_v5 }
 0x579   :  { %v2179_v44 = vpack.c.bf16 %v2251_v8, %v2250_v27 }
 0x58c   :  { %1432 = vrot.lane.b32.xlu0 %v2346_v10, %s2401_s1 }
 0x5ff   :  { %v1415_v29 = vpop.xlane.xlu0 %1414 }
 0x600   :  { %v1419_v45 = vmul.f32 0.03125, %v1415_v29 }
 0x602   :  { %v1421_v41 = vadd.f32 1e-05, %v1419_v45 }
 0x603   :  { %v1418_v35 = vpop.xlane.xlu0 %1417 }
 0x604   :  { %2342 = vrsqrt.f32 %v1421_v41  ;;  %v1420_v7 = vmul.f32 0.03125, %v1418_v35 }
 0x606   :  { %v1422_v31 = vadd.f32 1e-05, %v1420_v7 }
 0x607   :  { %v1433_v14 = vpop.permute.xlu0 %1432 }
 0x608   :  { %2344 = vrsqrt.f32 %v1422_v31 }
 0x60e   :  { %v2343_v57 = vpop.eup %2342 }
 0x60f   :  { %v1425_v58 = vmul.f32 %v2343_v57, %v1409_v38 }
 0x611   :  { %v1430_v40 = vmul.f32 %v1428_v18, %v1425_v58 }
 0x612   :  { %v2345_v53 = vpop.eup %2344 }
 0x613   :  { %v1426_v61 = vmul.f32 %v2345_v53, %v1410_v1  ;;  %v2899_v62 = vadd.f32 %v1433_v14, %v1430_v40 }
 0x615   :  { %v1431_v33 = vmul.f32 %v1428_v18, %v1426_v61  ;;  %2096 = vmatprep.mubr.msk.f32.mxu0 %vm53_vm0, %v2899_v62 }
 0x617   :  { %v2903_v63 = vadd.f32 %v1433_v14, %v1431_v33 }
 0x619   :  { %2097 = vmatmul.mubr.msk.f32.vlgmr.msra.gmra.mrb[2].mxu0 %vm53_vm0, %v2903_v63 }
 0x61a   :  { %2178 = vmatpush3.bf16.msra.mxu0 %v2175_v5 }
 0x61b   :  { %2180 = vmatprep.subr.bf16.mxu0 %v2179_v44 }
 0x61e   :  { %2182 = vmatpush3.bf16.msra.mxu0 %v2179_v44 }
 0x61f   :  { %2184 = vmatprep.subr.bf16.mxu0 %v2183_v49 }
 0x6ec   :  { %v2098_v24 = vpop.f32.mrb[2].mxu0 }
 0x6ed   :  { %v1519_v17 = vadd.f32 %v2098_v24, %v1960_v6  ;;  %v1513_v39 = vpop.f32.mrb[3].mxu0 }
 0x6ee   :  { %v1514_v47 = vadd.f32 %v1960_v6, %v1513_v39 }
 0x6ef   :  { %v1523_v59 = vmax.f32 %v1519_v17, 0.0 }
 0x6f0   :  { %v1522_v22 = vmax.f32 %v1514_v47, 0.0 }
 0x6f1   :  { %1528 = vrot.lane.b32.xlu0 %v1523_v59, %s2398_s7 }
 0x6f2   :  { %1526 = vrot.lane.b32.xlu1 %v1522_v22, %s2398_s7 }
 0x6f5   :  { %2258 = vrot.lane.b32.xlu0 %v2247_v25, %s2399_s0 }
 0x6f6   :  { %2253 = vrot.lane.b32.xlu1 %v2242_v26, %s2399_s0 }
 0x6f9   :  { %1704 = vrot.lane.b32.xlu0 %v1522_v22, %s2399_s0 }
 0x6fa   :  { %2263 = vrot.lane.b32.xlu1 %v2242_v26, %s2401_s1  ;;  %v1971_v26 = vld [vmem:[#allocation2 + $0x62] ss:$0 sm:$0xff] }
 0x6fd   :  { %2268 = vrot.lane.b32.xlu0 %v2247_v25, %s2401_s1 }
 0x6fe   :  { %1706 = vrot.lane.b32.xlu1 %v1523_v59, %s2399_s0 }
 0x701   :  { %1803 = vrot.lane.b32.xlu0 %v1523_v59, %s2401_s1 }
 0x702   :  { %1801 = vrot.lane.b32.xlu1 %v1522_v22, %s2401_s1 }
 0x705   :  { %1912 = vperm.xlu0 %2273, %v1907_v60  }
 0x706   :  { %1909 = vperm.xlu1 %2272, %v1906_v20  }
 0x763   :  { %v1529_v3 = vpop.permute.xlu0 %1528 }
 0x764   :  { %v1527_v9 = vpop.permute.xlu1 %1526 }
 0x765   :  { %2107 = vmatprep.mubr.msk.f32.mxu0 %vm53_vm0, %v1527_v9 }
 0x766   :  { %2108 = vmatmul.mubr.msk.f32.vlgmr.msra.gmra.mrb[4].mxu0 %vm53_vm0, %v1529_v3 }
 0x767   :  { %2186 = vmatpush3.bf16.msra.mxu0 %v2183_v49  ;;  %v2259_v16 = vpop.permute.xlu0 %2258  ;;  %2118 = vmatprep.mubr.msk.f32.mxu0 %vm53_vm0, %v1522_v22 }
 0x768   :  { %v2261_v10 = vunpack.i.h.bf16 %v2259_v16  ;;  %v2260_v0 = vunpack.i.l.bf16 %v2259_v16  ;;  %v2254_v37 = vpop.permute.xlu1 %2253  ;;  %2188 = vmatprep.subr.bf16.mxu0 %v2187_v13 }
 0x769   :  { %v2256_v4 = vunpack.i.h.bf16 %v2254_v37  ;;  %v2255_v54 = vunpack.i.l.bf16 %v2254_v37 }
 0x76a   :  { %v2195_v19 = vpack.c.bf16 %v2261_v10, %v2260_v0 }
 0x76b   :  { %v2191_v1 = vpack.c.bf16 %v2256_v4, %v2255_v54  ;;  %2190 = vmatpush3.bf16.msra.mxu0 %v2187_v13  ;;  %v1705_v38 = vpop.permute.xlu0 %1704 }
 0x76c   :  { %v2264_v36 = vpop.permute.xlu1 %2263 }
 0x76d   :  { %v2266_v28 = vunpack.i.h.bf16 %v2264_v36  ;;  %v2265_v34 = vunpack.i.l.bf16 %v2264_v36  ;;  %2192 = vmatprep.subr.bf16.mxu0 %v2191_v1 }
 0x76e   :  { %2119 = vmatmul.mubr.msk.f32.vlgmr.msra.gmra.mrb[4].mxu0 %vm53_vm0, %v1523_v59 }
 0x76f   :  { %2194 = vmatpush3.bf16.msra.mxu0 %v2191_v1  ;;  %v2269_v48 = vpop.permute.xlu0 %2268  ;;  %2129 = vmatprep.mubr.msk.f32.mxu0 %vm53_vm0, %v1705_v38  ;;  %v2199_v42 = vpack.c.bf16 %v2266_v28, %v2265_v34 }
 0x770   :  { %v2271_v12 = vunpack.i.h.bf16 %v2269_v48  ;;  %v2270_v32 = vunpack.i.l.bf16 %v2269_v48  ;;  %v1707_v11 = vpop.permute.xlu1 %1706  ;;  %2196 = vmatprep.subr.bf16.mxu0 %v2195_v19 }
 0x772   :  { %v2203_v52 = vpack.c.bf16 %v2271_v12, %v2270_v32 }
 0x773   :  { %2198 = vmatpush3.bf16.msra.mxu0 %v2195_v19  ;;  %v1804_v46 = vpop.permute.xlu0 %1803 }
 0x774   :  { %2200 = vmatprep.subr.bf16.mxu0 %v2199_v42  ;;  %v1802_v51 = vpop.permute.xlu1 %1801 }
 0x776   :  { %2130 = vmatmul.mubr.msk.f32.vlgmr.msra.gmra.mrb[4].mxu0 %vm53_vm0, %v1707_v11 }
 0x777   :  { %2202 = vmatpush3.bf16.msra.mxu0 %v2199_v42  ;;  %2140 = vmatprep.mubr.msk.f32.mxu0 %vm53_vm0, %v1802_v51 }
 0x778   :  { %2204 = vmatprep.subr.bf16.mxu0 %v2203_v52 }
 0x77b   :  { %2206 = vmatpush3.bf16.msra.mxu0 %v2203_v52 }
 0x77e   :  { %2141 = vmatmul.mubr.msk.f32.vlgmr.msra.gmra.mrb[4].mxu0 %vm53_vm0, %v1804_v46 }
 0x784   :  { %v1913_v15 = vpop.permute.xlu0 %1912 }
 0x785   :  { %v1910_v55 = vpop.permute.xlu1 %1909  ;;  %vm1915_vm12 = vcmp.eq.s32.totalorder %v1913_v15, 1 }
 0x786   :  { %vm1914_vm13 = vcmp.eq.s32.totalorder %v1910_v55, 1 }
 0x851   :  { %v2142_v25 = vpop.f32.mrb[4].mxu0 }
 0x852   :  { %v1903_v29 = vadd.f32 %v2142_v25, %v1971_v26  ;;  %v1887_v45 = vpop.f32.mrb[5].mxu0 }
 0x853   :  { %v1902_v41 = vadd.f32 %v1971_v26, %v1887_v45 }
 0x854   :  { %v1917_v35 = vsel %vm1915_vm12, 0.0, %v1903_v29 }
 0x855   :  { %v1919_v7 = vadd.f32 %v1917_v35, %v2903_v63  ;;  %v1916_v31 = vsel %vm1914_vm13, 0.0, %v1902_v41 }
 0x856   :  { %v1918_v57 = vadd.f32 %v1916_v31, %v2899_v62 }
 0x857   :  { %1921 = vst.msk [vmem:[#allocation5 + $0x8] sm:$0xff] %vm53_vm0, %v1919_v7 }
 0x858   :  { %1920 = vst.msk [vmem:[#allocation5] sm:$0xff] %vm53_vm0, %v1918_v57 }
 0x859   :  { %2380 = shalt.err (!%p2377_p12)
}
 0x85a   :  { %s2381_s19 = scalar_lea.hbm %s2956_s4, 256 }
 0x85b   :  { %p2382_p13 = scmp.ne.s32.totalorder %s2956_s4, %s2381_s19  ;;  %p2385_p0 = scmp.lt.u32.totalorder %s2381_s19, %s2956_s4 }
 0x85d   :  { %p2387_p1 = pnand %p2385_p0, %p2382_p13 }
 0x85f   :  { %2390 = shalt.err (!%p2387_p1)
}
 0x860   :  { %1933 = dma.vmem_to_hbm [thread:$0]  %s1928_s15, 256, %s2956_s4, [#allocation4], %s2396_s25, %s2396_s25, %s2397_s26  }
 0x861   :  { %2393 = dma.done.wait [#allocation4], 256  }
 0x862   :  { %2394 = vsyncadd [#allocation4], 4294967040 }
 0x863   :  { %1937 = vsyncpa [#allocation3], 1 }
 0x864   :  { %1938 = vsyncpa [#allocation4], 1 }

</bundles_post_ra>
